<compile_context>
chip_gen: v6e
topology: v6e:2x2x1
jax: 0.10.0
libtpu: 0.0.40
codegen_flags: <defaults>
</compile_context>

<pallas_src>
import jax
import jax.numpy as jnp
from jax.experimental import pallas as pl
from jax.experimental.pallas import tpu as pltpu


def _mlp_kernel(x_ref, wfc_ref, bfc_ref, wproj_ref, bproj_ref, o_ref, acc_ref):
    # x_ref:    (tm, C)  bf16    wfc_ref:   (C, tH) bf16   bfc_ref:   (1, tH) f32
    # wproj_ref:(tH, C)  bf16    bproj_ref: (1, C)  f32    acc_ref:   (tm, C) f32
    k = pl.program_id(1)

    @pl.when(k == 0)
    def _init():
        acc_ref[...] = jnp.zeros_like(acc_ref)

    # ---- c_fc (partial along H): bf16 MXU matmul, f32 accumulation ----
    h = jnp.dot(x_ref[...], wfc_ref[...], preferred_element_type=jnp.float32)
    h = h + bfc_ref[0]

    # ---- GELU, tanh approximation, f32 math; bf16 cast fused into the chain ----
    c = 0.7978845608028654  # sqrt(2/pi)
    h = (0.5 * h * (1.0 + jnp.tanh(c * (h + 0.044715 * h * h * h)))
         ).astype(jnp.bfloat16)

    # ---- c_proj (partial along H): accumulate into the f32 scratch ----
    acc_ref[...] += jnp.dot(h, wproj_ref[...],
                            preferred_element_type=jnp.float32)

    @pl.when(k == pl.num_programs(1) - 1)
    def _finalize():
        o_ref[...] = (acc_ref[...] + bproj_ref[0]).astype(o_ref.dtype)


def _working_set_bytes(tm, C, tH, kH):
    """Estimate of the per-step VMEM working set for the chosen tiling."""
    wbuf = 1 if kH == 1 else 2          # resident weights are single-buffered
    b = 2 * tm * C * 2                  # x tiles (bf16, double-buffered)
    b += 2 * tm * C * 4                 # out tiles (f32, double-buffered)
    b += tm * C * 4                     # f32 accumulator scratch
    b += wbuf * (C * tH + tH * C) * 2   # weight blocks (bf16)
    b += wbuf * (tH + C) * 4            # bias blocks (f32)
    b += tm * tH * (4 + 2)              # f32 hidden + fused bf16 copy
    return b


def mlp_forward(x, w_fc, b_fc, w_proj, b_proj, *, tm=None,
                vmem_budget_bytes=44 * 1024 * 1024):
    """x: (B, T, C); w_fc: (C, 4C); b_fc: (4C,); w_proj: (4C, C); b_proj: (C,)."""
    B, T, C = x.shape
    H = w_fc.shape[1]
    assert w_fc.shape == (C, H) and w_proj.shape == (H, C)
    assert b_fc.shape == (H,) and b_proj.shape == (C,)

    N = B * T
    x2 = x.reshape(N, C).astype(jnp.bfloat16)   # bf16 activations into the kernel

    # ---- row tiling: large tiles where rows exist; >= 2 grid steps always ----
    if tm is None:
        tm = 512 if N >= 1024 else (256 if N >= 512 else 128)
    n_tiles = max(pl.cdiv(N, tm), 2)            # >=2 steps: pipeline + 2 v7x TCs
    n_pad = n_tiles * tm
    if n_pad != N:
        x2 = jnp.pad(x2, ((0, n_pad - N), (0, 0)))

    # ---- hidden-dim tiling: largest tH whose working set fits the budget ----
    tH, h_pad = H, H
    if _working_set_bytes(tm, C, H, 1) > vmem_budget_bytes:
        for cand in (4096, 2048, 1024, 512, 256, 128):
            if cand >= H:
                continue
            hp = pl.cdiv(H, cand) * cand
            if _working_set_bytes(tm, C, cand, hp // cand) <= vmem_budget_bytes:
                tH, h_pad = cand, hp
                break
        else:
            tH, h_pad = 128, pl.cdiv(H, 128) * 128
    kH = h_pad // tH

    # bf16 weights (half DMA, full-rate MXU); biases stay f32.
    w_fc_b = w_fc.astype(jnp.bfloat16)
    w_proj_b = w_proj.astype(jnp.bfloat16)
    b_fc2 = b_fc.reshape(1, H).astype(jnp.float32)
    b_proj2 = b_proj.reshape(1, C).astype(jnp.float32)
    if h_pad != H:
        # Zero-pad the hidden dim: gelu(0) == 0 and zero rows of w_proj add 0.
        w_fc_b = jnp.pad(w_fc_b, ((0, 0), (0, h_pad - H)))
        b_fc2 = jnp.pad(b_fc2, ((0, 0), (0, h_pad - H)))
        w_proj_b = jnp.pad(w_proj_b, ((0, h_pad - H), (0, 0)))

    weight_reads = 1 if kH == 1 else n_tiles
    cost = pl.CostEstimate(
        flops=2 * n_pad * (C * h_pad + h_pad * C),
        transcendentals=n_pad * h_pad,                       # one tanh / hidden act
        bytes_accessed=(n_pad * C * 2                        # x in (bf16)
                        + n_pad * C * 4                      # out (f32)
                        + weight_reads * (C * h_pad + h_pad * C) * 2
                        + (h_pad + C) * 4),                  # biases
    )

    vmem_limit = int(min(64 * 1024 * 1024,
                         max(16 * 1024 * 1024,
                             2 * _working_set_bytes(tm, C, tH, kH))))

    def build(single_buffer_resident):
        resident_mode = (pl.Buffered(1)
                         if (single_buffer_resident and kH == 1) else None)

        def wspec(shape, index_map):
            if resident_mode is not None:
                return pl.BlockSpec(shape, index_map, pipeline_mode=resident_mode)
            return pl.BlockSpec(shape, index_map)

        grid_spec = pltpu.PrefetchScalarGridSpec(
            num_scalar_prefetch=0,
            grid=(n_tiles, kH),
            in_specs=[
                pl.BlockSpec((tm, C), lambda i, k: (i, 0)),   # x row tile
                wspec((C, tH), lambda i, k: (0, k)),          # w_fc block
                wspec((1, tH), lambda i, k: (0, k)),          # b_fc block
                wspec((tH, C), lambda i, k: (k, 0)),          # w_proj block
                wspec((1, C), lambda i, k: (0, 0)),           # b_proj (constant)
            ],
            out_specs=pl.BlockSpec((tm, C), lambda i, k: (i, 0)),
            scratch_shapes=[pltpu.VMEM((tm, C), jnp.float32)],
        )
        return pl.pallas_call(
            _mlp_kernel,
            out_shape=jax.ShapeDtypeStruct((n_pad, C), x.dtype),
            grid_spec=grid_spec,
            compiler_params=pltpu.CompilerParams(
                dimension_semantics=("parallel", "arbitrary"),
                vmem_limit_bytes=vmem_limit,
            ),
            cost_estimate=cost,
        )

    args = (x2, w_fc_b, b_fc2, w_proj_b, b_proj2)
    try:
        out = build(single_buffer_resident=True)(*args)
    except Exception:
        # Fallback if this JAX build rejects pl.Buffered(1) on a BlockSpec.
        out = build(single_buffer_resident=False)(*args)

    return out[:N].reshape(B, T, C)


def _reference(x, w_fc, b_fc, w_proj, b_proj):
    """Pure-JAX f32 reference replicating the PyTorch MLP forward."""
    h = x @ w_fc + b_fc
    c = 0.7978845608028654
    h = 0.5 * h * (1.0 + jnp.tanh(c * (h + 0.044715 * h ** 3)))
    return h @ w_proj + b_proj


if __name__ == "__main__":
    # Small config consistent with the module: B=2, T=8 (seq), C=32 (n_embd),
    # hidden = 4*C = 128.
    B, T, C = 2, 8, 32
    H = 4 * C

    key = jax.random.PRNGKey(0)
    kx, kw1, kb1, kw2, kb2 = jax.random.split(key, 5)

    x = jax.random.normal(kx, (B, T, C), dtype=jnp.float32)
    # Weights stored as (in_features, out_features) == nn.Linear weight.T.
    w_fc = jax.random.normal(kw1, (C, H), dtype=jnp.float32) * 0.02
    b_fc = jax.random.normal(kb1, (H,), dtype=jnp.float32) * 0.02
    w_proj = jax.random.normal(kw2, (H, C), dtype=jnp.float32) * 0.02
    b_proj = jax.random.normal(kb2, (C,), dtype=jnp.float32) * 0.02

    out = mlp_forward(x, w_fc, b_fc, w_proj, b_proj)
    out = jax.block_until_ready(out)

    ref = _reference(x, w_fc, b_fc, w_proj, b_proj)
    assert out.shape == (B, T, C)
    # bf16 MXU operands / bf16 activations (f32 accumulation) -> loose tolerance.
    assert jnp.allclose(out, ref, atol=1e-2, rtol=5e-2), float(
        jnp.max(jnp.abs(out - ref)))

    print("KERNEL_OK")
</pallas_src>

<mosaic_0001>
module attributes {stable_mosaic.version = 11 : i64} {
  func.func @_mlp_kernel(%arg0: i32, %arg1: i32, %arg2: memref<128x32xbf16, #tpu.memory_space<vmem>>, %arg3: memref<32x128xbf16, #tpu.memory_space<vmem>>, %arg4: memref<1x128xf32, #tpu.memory_space<vmem>>, %arg5: memref<128x32xbf16, #tpu.memory_space<vmem>>, %arg6: memref<1x32xf32, #tpu.memory_space<vmem>>, %arg7: memref<128x32xf32, #tpu.memory_space<vmem>>, %arg8: memref<128x32xf32, #tpu.memory_space<vmem>>) attributes {dimension_semantics = [#tpu.dimension_semantics<parallel>, #tpu.dimension_semantics<arbitrary>], iteration_bounds = array<i64: 2, 1>, scalar_prefetch = 0 : i64, scratch_operands = 1 : i64, tpu.core_type = #tpu.core_type<tc>, window_params = [{transform_indices = @transform_0, window_bounds = array<i64: 128, 32>}, {pipeline_mode = #tpu.pipeline_mode<synchronous>, transform_indices = @transform_1, window_bounds = array<i64: 32, 128>}, {pipeline_mode = #tpu.pipeline_mode<synchronous>, transform_indices = @transform_2, window_bounds = array<i64: 1, 128>}, {pipeline_mode = #tpu.pipeline_mode<synchronous>, transform_indices = @transform_3, window_bounds = array<i64: 128, 32>}, {pipeline_mode = #tpu.pipeline_mode<synchronous>, transform_indices = @transform_4, window_bounds = array<i64: 1, 32>}, {transform_indices = @transform_5, window_bounds = array<i64: 128, 32>}]} {
    %c0_i32 = arith.constant 0 : i32
    %0 = arith.cmpi eq, %arg1, %c0_i32 : i32
    %1 = arith.extui %0 : i1 to i32
    %c0_i32_0 = arith.constant 0 : i32
    %2 = arith.cmpi ne, %1, %c0_i32_0 : i32
    scf.if %2 {
      %cst_19 = arith.constant 0.000000e+00 : f32
      %33 = vector.broadcast %cst_19 : f32 to vector<128x32xf32>
      %c0_20 = arith.constant 0 : index
      %c0_21 = arith.constant 0 : index
      %34 = vector.load %arg8[%c0_20, %c0_21] : memref<128x32xf32, #tpu.memory_space<vmem>>, vector<128x32xf32>
      tpu.vector_store %arg8[%c0_20, %c0_21], %33 {strides = array<i32>} : memref<128x32xf32, #tpu.memory_space<vmem>>, vector<128x32xf32>,
    } else {
    }
    %c0 = arith.constant 0 : index
    %c0_1 = arith.constant 0 : index
    %3 = vector.load %arg2[%c0, %c0_1] : memref<128x32xbf16, #tpu.memory_space<vmem>>, vector<128x32xbf16>
    %c0_2 = arith.constant 0 : index
    %c0_3 = arith.constant 0 : index
    %4 = vector.load %arg3[%c0_2, %c0_3] : memref<32x128xbf16, #tpu.memory_space<vmem>>, vector<32x128xbf16>
    %cst = arith.constant dense<0.000000e+00> : vector<128x128xf32>
    %5 = tpu.matmul %3, %4, %cst {dimension_numbers = #tpu.dot_dimension_numbers<[1], [0], [0], [1], [0, 0, 1, 1], [], []>} : vector<128x32xbf16>, vector<32x128xbf16>, vector<128x128xf32> -> vector<128x128xf32>
    %c0_4 = arith.constant 0 : index
    %c0_5 = arith.constant 0 : index
    %6 = vector.load %arg4[%c0_4, %c0_5] : memref<1x128xf32, #tpu.memory_space<vmem>>, vector<1x128xf32>
    %7 = vector.shape_cast %6 : vector<1x128xf32> to vector<128xf32>
    %8 = vector.shape_cast %7 : vector<128xf32> to vector<1x128xf32>
    %9 = vector.broadcast %8 : vector<1x128xf32> to vector<128x128xf32>
    %10 = arith.addf %5, %9 : vector<128x128xf32>
    %cst_6 = arith.constant 5.000000e-01 : f32
    %11 = vector.broadcast %cst_6 : f32 to vector<128x128xf32>
    %12 = arith.mulf %11, %10 : vector<128x128xf32>
    %cst_7 = arith.constant 4.471500e-02 : f32
    %13 = vector.broadcast %cst_7 : f32 to vector<128x128xf32>
    %14 = arith.mulf %13, %10 : vector<128x128xf32>
    %15 = arith.mulf %14, %10 : vector<128x128xf32>
    %16 = arith.mulf %15, %10 : vector<128x128xf32>
    %17 = arith.addf %10, %16 : vector<128x128xf32>
    %cst_8 = arith.constant 0.797884583 : f32
    %18 = vector.broadcast %cst_8 : f32 to vector<128x128xf32>
    %19 = arith.mulf %18, %17 : vector<128x128xf32>
    %20 = math.tanh %19 : vector<128x128xf32>
    %cst_9 = arith.constant 1.000000e+00 : f32
    %21 = vector.broadcast %cst_9 : f32 to vector<128x128xf32>
    %22 = arith.addf %21, %20 : vector<128x128xf32>
    %23 = arith.mulf %12, %22 : vector<128x128xf32>
    %24 = arith.truncf %23 : vector<128x128xf32> to vector<128x128xbf16>
    %c0_10 = arith.constant 0 : index
    %c0_11 = arith.constant 0 : index
    %25 = vector.load %arg8[%c0_10, %c0_11] : memref<128x32xf32, #tpu.memory_space<vmem>>, vector<128x32xf32>
    %c0_12 = arith.constant 0 : index
    %c0_13 = arith.constant 0 : index
    %26 = vector.load %arg5[%c0_12, %c0_13] : memref<128x32xbf16, #tpu.memory_space<vmem>>, vector<128x32xbf16>
    %cst_14 = arith.constant dense<0.000000e+00> : vector<128x32xf32>
    %27 = tpu.matmul %24, %26, %cst_14 {dimension_numbers = #tpu.dot_dimension_numbers<[1], [0], [0], [1], [0, 0, 1, 1], [], []>} : vector<128x128xbf16>, vector<128x32xbf16>, vector<128x32xf32> -> vector<128x32xf32>
    %28 = arith.addf %25, %27 : vector<128x32xf32>
    %c0_15 = arith.constant 0 : index
    %c0_16 = arith.constant 0 : index
    %29 = vector.load %arg8[%c0_15, %c0_16] : memref<128x32xf32, #tpu.memory_space<vmem>>, vector<128x32xf32>
    tpu.vector_store %arg8[%c0_15, %c0_16], %28 {strides = array<i32>} : memref<128x32xf32, #tpu.memory_space<vmem>>, vector<128x32xf32>,
    %c0_i32_17 = arith.constant 0 : i32
    %30 = arith.cmpi eq, %arg1, %c0_i32_17 : i32
    %31 = arith.extui %30 : i1 to i32
    %c0_i32_18 = arith.constant 0 : i32
    %32 = arith.cmpi ne, %31, %c0_i32_18 : i32
    scf.if %32 {
      %c0_19 = arith.constant 0 : index
      %c0_20 = arith.constant 0 : index
      %33 = vector.load %arg8[%c0_19, %c0_20] : memref<128x32xf32, #tpu.memory_space<vmem>>, vector<128x32xf32>
      %c0_21 = arith.constant 0 : index
      %c0_22 = arith.constant 0 : index
      %34 = vector.load %arg6[%c0_21, %c0_22] : memref<1x32xf32, #tpu.memory_space<vmem>>, vector<1x32xf32>
      %35 = vector.shape_cast %34 : vector<1x32xf32> to vector<32xf32>
      %36 = vector.shape_cast %35 : vector<32xf32> to vector<1x32xf32>
      %37 = vector.broadcast %36 : vector<1x32xf32> to vector<128x32xf32>
      %38 = arith.addf %33, %37 : vector<128x32xf32>
      %c0_23 = arith.constant 0 : index
      %c0_24 = arith.constant 0 : index
      %39 = vector.load %arg7[%c0_23, %c0_24] : memref<128x32xf32, #tpu.memory_space<vmem>>, vector<128x32xf32>
      tpu.vector_store %arg7[%c0_23, %c0_24], %38 {strides = array<i32>} : memref<128x32xf32, #tpu.memory_space<vmem>>, vector<128x32xf32>,
    } else {
    }
    return
  }
  func.func @transform_0(%arg0: i32, %arg1: i32) -> (i32, i32) {
    %c0_i32 = arith.constant 0 : i32
    %c0_i32_0 = arith.constant 0 : i32
    return %arg0, %c0_i32 : i32, i32
  }
  func.func @transform_1(%arg0: i32, %arg1: i32) -> (i32, i32) {
    %c0_i32 = arith.constant 0 : i32
    %c0_i32_0 = arith.constant 0 : i32
    return %c0_i32, %arg1 : i32, i32
  }
  func.func @transform_2(%arg0: i32, %arg1: i32) -> (i32, i32) {
    %c0_i32 = arith.constant 0 : i32
    %c0_i32_0 = arith.constant 0 : i32
    return %c0_i32, %arg1 : i32, i32
  }
  func.func @transform_3(%arg0: i32, %arg1: i32) -> (i32, i32) {
    %c0_i32 = arith.constant 0 : i32
    %c0_i32_0 = arith.constant 0 : i32
    return %arg1, %c0_i32 : i32, i32
  }
  func.func @transform_4(%arg0: i32, %arg1: i32) -> (i32, i32) {
    %c0_i32 = arith.constant 0 : i32
    %c0_i32_0 = arith.constant 0 : i32
    %c0_i32_1 = arith.constant 0 : i32
    return %c0_i32, %c0_i32_0 : i32, i32
  }
  func.func @transform_5(%arg0: i32, %arg1: i32) -> (i32, i32) {
    %c0_i32 = arith.constant 0 : i32
    %c0_i32_0 = arith.constant 0 : i32
    return %arg0, %c0_i32 : i32, i32
  }
}

module attributes {stable_mosaic.version = 11 : i64} {
  func.func @_mlp_kernel(%arg0: i32, %arg1: i32, %arg2: memref<128x32xbf16, #tpu.memory_space<vmem>>, %arg3: memref<32x128xbf16, #tpu.memory_space<vmem>>, %arg4: memref<1x128xf32, #tpu.memory_space<vmem>>, %arg5: memref<128x32xbf16, #tpu.memory_space<vmem>>, %arg6: memref<1x32xf32, #tpu.memory_space<vmem>>, %arg7: memref<128x32xf32, #tpu.memory_space<vmem>>, %arg8: memref<128x32xf32, #tpu.memory_space<vmem>>) attributes {dimension_semantics = [#tpu.dimension_semantics<parallel>, #tpu.dimension_semantics<arbitrary>], iteration_bounds = array<i64: 2, 1>, scalar_prefetch = 0 : i64, scratch_operands = 1 : i64, tpu.core_type = #tpu.core_type<tc>, window_params = [{transform_indices = @transform_0, window_bounds = array<i64: 128, 32>}, {transform_indices = @transform_1, window_bounds = array<i64: 32, 128>}, {transform_indices = @transform_2, window_bounds = array<i64: 1, 128>}, {transform_indices = @transform_3, window_bounds = array<i64: 128, 32>}, {pipeline_mode = #tpu.pipeline_mode<synchronous>, transform_indices = @transform_4, window_bounds = array<i64: 1, 32>}, {transform_indices = @transform_5, window_bounds = array<i64: 128, 32>}]} {
    %c0_i32 = arith.constant 0 : i32
    %0 = arith.cmpi eq, %arg1, %c0_i32 : i32
    %1 = arith.extui %0 : i1 to i32
    %c0_i32_0 = arith.constant 0 : i32
    %2 = arith.cmpi ne, %1, %c0_i32_0 : i32
    scf.if %2 {
      %cst_19 = arith.constant 0.000000e+00 : f32
      %33 = vector.broadcast %cst_19 : f32 to vector<128x32xf32>
      %c0_20 = arith.constant 0 : index
      %c0_21 = arith.constant 0 : index
      %34 = vector.load %arg8[%c0_20, %c0_21] : memref<128x32xf32, #tpu.memory_space<vmem>>, vector<128x32xf32>
      tpu.vector_store %arg8[%c0_20, %c0_21], %33 {strides = array<i32>} : memref<128x32xf32, #tpu.memory_space<vmem>>, vector<128x32xf32>,
    } else {
    }
    %c0 = arith.constant 0 : index
    %c0_1 = arith.constant 0 : index
    %3 = vector.load %arg2[%c0, %c0_1] : memref<128x32xbf16, #tpu.memory_space<vmem>>, vector<128x32xbf16>
    %c0_2 = arith.constant 0 : index
    %c0_3 = arith.constant 0 : index
    %4 = vector.load %arg3[%c0_2, %c0_3] : memref<32x128xbf16, #tpu.memory_space<vmem>>, vector<32x128xbf16>
    %cst = arith.constant dense<0.000000e+00> : vector<128x128xf32>
    %5 = tpu.matmul %3, %4, %cst {dimension_numbers = #tpu.dot_dimension_numbers<[1], [0], [0], [1], [0, 0, 1, 1], [], []>} : vector<128x32xbf16>, vector<32x128xbf16>, vector<128x128xf32> -> vector<128x128xf32>
    %c0_4 = arith.constant 0 : index
    %c0_5 = arith.constant 0 : index
    %6 = vector.load %arg4[%c0_4, %c0_5] : memref<1x128xf32, #tpu.memory_space<vmem>>, vector<1x128xf32>
    %7 = vector.shape_cast %6 : vector<1x128xf32> to vector<128xf32>
    %8 = vector.shape_cast %7 : vector<128xf32> to vector<1x128xf32>
    %9 = vector.broadcast %8 : vector<1x128xf32> to vector<128x128xf32>
    %10 = arith.addf %5, %9 : vector<128x128xf32>
    %cst_6 = arith.constant 5.000000e-01 : f32
    %11 = vector.broadcast %cst_6 : f32 to vector<128x128xf32>
    %12 = arith.mulf %11, %10 : vector<128x128xf32>
    %cst_7 = arith.constant 4.471500e-02 : f32
    %13 = vector.broadcast %cst_7 : f32 to vector<128x128xf32>
    %14 = arith.mulf %13, %10 : vector<128x128xf32>
    %15 = arith.mulf %14, %10 : vector<128x128xf32>
    %16 = arith.mulf %15, %10 : vector<128x128xf32>
    %17 = arith.addf %10, %16 : vector<128x128xf32>
    %cst_8 = arith.constant 0.797884583 : f32
    %18 = vector.broadcast %cst_8 : f32 to vector<128x128xf32>
    %19 = arith.mulf %18, %17 : vector<128x128xf32>
    %20 = math.tanh %19 : vector<128x128xf32>
    %cst_9 = arith.constant 1.000000e+00 : f32
    %21 = vector.broadcast %cst_9 : f32 to vector<128x128xf32>
    %22 = arith.addf %21, %20 : vector<128x128xf32>
    %23 = arith.mulf %12, %22 : vector<128x128xf32>
    %24 = arith.truncf %23 : vector<128x128xf32> to vector<128x128xbf16>
    %c0_10 = arith.constant 0 : index
    %c0_11 = arith.constant 0 : index
    %25 = vector.load %arg8[%c0_10, %c0_11] : memref<128x32xf32, #tpu.memory_space<vmem>>, vector<128x32xf32>
    %c0_12 = arith.constant 0 : index
    %c0_13 = arith.constant 0 : index
    %26 = vector.load %arg5[%c0_12, %c0_13] : memref<128x32xbf16, #tpu.memory_space<vmem>>, vector<128x32xbf16>
    %cst_14 = arith.constant dense<0.000000e+00> : vector<128x32xf32>
    %27 = tpu.matmul %24, %26, %cst_14 {dimension_numbers = #tpu.dot_dimension_numbers<[1], [0], [0], [1], [0, 0, 1, 1], [], []>} : vector<128x128xbf16>, vector<128x32xbf16>, vector<128x32xf32> -> vector<128x32xf32>
    %28 = arith.addf %25, %27 : vector<128x32xf32>
    %c0_15 = arith.constant 0 : index
    %c0_16 = arith.constant 0 : index
    %29 = vector.load %arg8[%c0_15, %c0_16] : memref<128x32xf32, #tpu.memory_space<vmem>>, vector<128x32xf32>
    tpu.vector_store %arg8[%c0_15, %c0_16], %28 {strides = array<i32>} : memref<128x32xf32, #tpu.memory_space<vmem>>, vector<128x32xf32>,
    %c0_i32_17 = arith.constant 0 : i32
    %30 = arith.cmpi eq, %arg1, %c0_i32_17 : i32
    %31 = arith.extui %30 : i1 to i32
    %c0_i32_18 = arith.constant 0 : i32
    %32 = arith.cmpi ne, %31, %c0_i32_18 : i32
    scf.if %32 {
      %c0_19 = arith.constant 0 : index
      %c0_20 = arith.constant 0 : index
      %33 = vector.load %arg8[%c0_19, %c0_20] : memref<128x32xf32, #tpu.memory_space<vmem>>, vector<128x32xf32>
      %c0_21 = arith.constant 0 : index
      %c0_22 = arith.constant 0 : index
      %34 = vector.load %arg6[%c0_21, %c0_22] : memref<1x32xf32, #tpu.memory_space<vmem>>, vector<1x32xf32>
      %35 = vector.shape_cast %34 : vector<1x32xf32> to vector<32xf32>
      %36 = vector.shape_cast %35 : vector<32xf32> to vector<1x32xf32>
      %37 = vector.broadcast %36 : vector<1x32xf32> to vector<128x32xf32>
      %38 = arith.addf %33, %37 : vector<128x32xf32>
      %c0_23 = arith.constant 0 : index
      %c0_24 = arith.constant 0 : index
      %39 = vector.load %arg7[%c0_23, %c0_24] : memref<128x32xf32, #tpu.memory_space<vmem>>, vector<128x32xf32>
      tpu.vector_store %arg7[%c0_23, %c0_24], %38 {strides = array<i32>} : memref<128x32xf32, #tpu.memory_space<vmem>>, vector<128x32xf32>,
    } else {
    }
    return
  }
  func.func @transform_0(%arg0: i32, %arg1: i32) -> (i32, i32) {
    %c0_i32 = arith.constant 0 : i32
    %c0_i32_0 = arith.constant 0 : i32
    return %arg0, %c0_i32 : i32, i32
  }
  func.func @transform_1(%arg0: i32, %arg1: i32) -> (i32, i32) {
    %c0_i32 = arith.constant 0 : i32
    %c0_i32_0 = arith.constant 0 : i32
    return %c0_i32, %arg1 : i32, i32
  }
  func.func @transform_2(%arg0: i32, %arg1: i32) -> (i32, i32) {
    %c0_i32 = arith.constant 0 : i32
    %c0_i32_0 = arith.constant 0 : i32
    return %c0_i32, %arg1 : i32, i32
  }
  func.func @transform_3(%arg0: i32, %arg1: i32) -> (i32, i32) {
    %c0_i32 = arith.constant 0 : i32
    %c0_i32_0 = arith.constant 0 : i32
    return %arg1, %c0_i32 : i32, i32
  }
  func.func @transform_4(%arg0: i32, %arg1: i32) -> (i32, i32) {
    %c0_i32 = arith.constant 0 : i32
    %c0_i32_0 = arith.constant 0 : i32
    %c0_i32_1 = arith.constant 0 : i32
    return %c0_i32, %c0_i32_0 : i32, i32
  }
  func.func @transform_5(%arg0: i32, %arg1: i32) -> (i32, i32) {
    %c0_i32 = arith.constant 0 : i32
    %c0_i32_0 = arith.constant 0 : i32
    return %arg0, %c0_i32 : i32, i32
  }
}

</mosaic_0001>

<bundles_post_ra>
// kernel: tpu_custom_call.1
= control target key start
LH: loop header
LB: loop body
LE: loop exit
PB: predicated region body
PF: predicated region fallthrough
CT: control target
= control target key end

     0   :  { %s1308_s18 = smov 0   ;;  %s1310_s19 = smov 0   ;;  %s1603_s0 = inlined_call_operand.vmem [shape: bf16[256,32], index: 0, kind: input, shape index: {}]   ;;  %s1604_s1 = inlined_call_operand.vmem [shape: bf16[32,128], index: 1, kind: input, shape index: {}]   ;;  %s1605_s2 = inlined_call_operand.vmem [shape: f32[1,128], index: 2, kind: input, shape index: {}]   ;;  %s1606_s3 = inlined_call_operand.vmem [shape: bf16[128,32], index: 3, kind: input, shape index: {}]   ;;  %s1607_s4 = inlined_call_operand.vmem [shape: f32[1,32], index: 4, kind: input, shape index: {}]   ;;  %s1608_s5 = inlined_call_operand.vmem [shape: f32[256,32], index: 5, kind: output, shape index: {}]  }
   0x1   :  { %s1312_s20 = smov 0  }
   0x2 LB: > { %s27_s21 = sadd.s32 1, %s1271_s19  ;;  %p1049_p0 = scmp.ge.s32.totalorder %s1275_s20, 1  ;;  %s1275_s20 = sphi %s1312_s20, %s15_s20   ;;  %s1271_s19 = sphi %s1310_s19, %s1610_s19   ;;  %s1267_s18 = sphi %s1308_s18, %s1609_s18  }
   0x3   : > { %p29_p1 = scmp.ge.s32.totalorder %s27_s21, 2  ;;  %p228_p2 = scmp.lt.s32.totalorder %s1275_s20, 3 }
   0x5   : > { %s1612_s21 = smov (%p29_p1, %s27_s21), 0  ;;  %p229_p3 = pnand %p1049_p0, %p228_p2 }
   0x6   : > { %s1050_s24 = sshll.u32 (!%p229_p3), %s1267_s18, 4 }
   0x7   : > { %232 = sbr.rel (%p229_p3) target bundleno = 490 (0x1ea), region = 40  ;;  %p269_p4 = scmp.lt.s32.totalorder (!%p229_p3), %s1050_s24, 31 }
   0xc   : > { %v1203_v0 = vld [vmem:[%s1604_s1 + $0x8] sm:$0xff]   ;;  %v1204_v1 = vld [vmem:[%s1604_s1] sm:$0xff]   ;;  %s1614_s24 = smov (!%p269_p4, %s1050_s24), 31  ;;  %vm298_vm0 = vcmask 261120   ;;  %v1213_v10 = vld [vmem:[%s1606_s3 + $0x38] sm:$0xff]   ;;  %v1277_v18 = vmov 0.0  }
   0xd   : > { %1110 = vmatprep.subr.bf16.mxu0 %v1203_v0  ;;  %s1051_s27 = sshll.u32 %s1614_s24, 2  ;;  %1162 = vmatprep.subr.bf16.mxu1 %v1213_v10  ;;  %v1214_v11 = vld [vmem:[%s1606_s3 + $0x30] sm:$0xff]   ;;  %v1215_v12 = vld [vmem:[%s1606_s3 + $0x28] sm:$0xff]   ;;  %v1216_v13 = vld [vmem:[%s1606_s3 + $0x20] sm:$0xff]   ;;  %301 = vst.msk [vmem:[#allocation2 + $0x10] sm:$0xff] %vm298_vm0, %v1277_v18  ;;  %s1053_s28 = sshll.u32 %s1614_s24, 3 }
   0xe   : > { %1111 = vmatpush3.bf16.msra.mxu0 %v1203_v0  ;;  %s272_s30 = scalar_lea.vmem %s1603_s0, %s1051_s27  ;;  %1170 = vmatpush3.bf16.msra.mxu1 %v1213_v10  ;;  %v1217_v14 = vld [vmem:[%s1606_s3 + $0x18] sm:$0xff]   ;;  %v1218_v15 = vld [vmem:[%s1606_s3 + $0x10] sm:$0xff]   ;;  %v1219_v16 = vld [vmem:[%s1606_s3 + $0x8] sm:$0xff]   ;;  %299 = vst.msk [vmem:[#allocation2] sm:$0xff] %vm298_vm0, %v1277_v18  ;;  %s1532_s8 = scalar_lea.vmem %s1608_s5, %s1053_s28 }
   0xf   : > { %1112 = vmatprep.subr.bf16.mxu0 %v1204_v1  ;;  %v1205_v2 = vld [vmem:[%s272_s30] sm:$0xff]   ;;  %v1206_v3 = vld [vmem:[%s272_s30 + $0x8] sm:$0xff]   ;;  %v1207_v4 = vld [vmem:[%s272_s30 + $0x10] sm:$0xff]   ;;  %1163 = vmatprep.subr.bf16.mxu1 %v1214_v11  ;;  %300 = vst.msk [vmem:[#allocation2 + $0x8] sm:$0xff] %vm298_vm0, %v1277_v18 }
  0x10   : > { %1114 = vmatprep.mubr.msk.bf16.mxu0 %vm298_vm0, %v1205_v2  ;;  %v1208_v5 = vld [vmem:[%s272_s30 + $0x18] sm:$0xff]   ;;  %v1209_v6 = vld [vmem:[%s272_s30 + $0x20] sm:$0xff]   ;;  %v1210_v7 = vld [vmem:[%s272_s30 + $0x28] sm:$0xff]   ;;  %302 = vst.msk [vmem:[#allocation2 + $0x18] sm:$0xff] %vm298_vm0, %v1277_v18 }
  0x11   : > { %v1211_v8 = vld [vmem:[%s272_s30 + $0x30] sm:$0xff]   ;;  %v1212_v9 = vld [vmem:[%s272_s30 + $0x38] sm:$0xff]   ;;  %v1220_v17 = vld [vmem:[%s1606_s3] sm:$0xff]   ;;  %303 = vst.msk [vmem:[#allocation2 + $0x20] sm:$0xff] %vm298_vm0, %v1277_v18 }
  0x12   : > { %1113 = vmatpush3.bf16.msra.mxu0 %v1204_v1  ;;  %1171 = vmatpush3.bf16.msra.mxu1 %v1214_v11  ;;  %304 = vst.msk [vmem:[#allocation2 + $0x28] sm:$0xff] %vm298_vm0, %v1277_v18  ;;  %305 = vst.msk [vmem:[#allocation2 + $0x30] sm:$0xff] %vm298_vm0, %v1277_v18  ;;  %v1389_v19 = vld [vmem:[%s1605_s2] ss:$0 sm:$0xff] }
  0x13   : > { %1130 = vmatprep.subr.bf16.mxu0 %v1213_v10  ;;  %1164 = vmatprep.subr.bf16.mxu1 %v1215_v12  ;;  %306 = vst.msk [vmem:[#allocation2 + $0x38] sm:$0xff] %vm298_vm0, %v1277_v18  ;;  %307 = vst.msk [vmem:[#allocation2 + $0x40] sm:$0xff] %vm298_vm0, %v1277_v18 }
  0x14   : > { %308 = vst.msk [vmem:[#allocation2 + $0x48] sm:$0xff] %vm298_vm0, %v1277_v18  ;;  %309 = vst.msk [vmem:[#allocation2 + $0x50] sm:$0xff] %vm298_vm0, %v1277_v18 }
  0x15   : > { %1115 = vmatmul.mubr.msk.bf16.vlgmr.msra.gmra.mxu0 %vm298_vm0, %v1206_v3  ;;  %310 = vst.msk [vmem:[#allocation2 + $0x58] sm:$0xff] %vm298_vm0, %v1277_v18  ;;  %311 = vst.msk [vmem:[#allocation2 + $0x60] sm:$0xff] %vm298_vm0, %v1277_v18 }
  0x16   : > { %1118 = vmatprep.mubr.msk.bf16.mxu0 %vm298_vm0, %v1207_v4  ;;  %1131 = vmatpush3.bf16.msra.mxu0 %v1213_v10  ;;  %312 = vst.msk [vmem:[#allocation2 + $0x68] sm:$0xff] %vm298_vm0, %v1277_v18  ;;  %313 = vst.msk [vmem:[#allocation2 + $0x70] sm:$0xff] %vm298_vm0, %v1277_v18 }
  0x17   : > { %1132 = vmatprep.subr.bf16.mxu0 %v1214_v11  ;;  %1172 = vmatpush3.bf16.msra.mxu1 %v1215_v12  ;;  %314 = vst.msk [vmem:[#allocation2 + $0x78] sm:$0xff] %vm298_vm0, %v1277_v18 }
  0x18   : > { %1165 = vmatprep.subr.bf16.mxu1 %v1216_v13 }
  0x1a   : > { %1133 = vmatpush3.bf16.msra.mxu0 %v1214_v11 }
  0x1b   : > { %1134 = vmatprep.subr.bf16.mxu0 %v1215_v12  ;;  %1173 = vmatpush3.bf16.msra.mxu1 %v1216_v13 }
  0x1c   : > { %1166 = vmatprep.subr.bf16.mxu1 %v1217_v14 }
  0x1d   : > { %1119 = vmatmul.mubr.msk.bf16.gmra.mxu0 %vm298_vm0, %v1208_v5 }
  0x1e   : > { %1122 = vmatprep.mubr.msk.bf16.mxu0 %vm298_vm0, %v1209_v6  ;;  %1135 = vmatpush3.bf16.msra.mxu0 %v1215_v12 }
  0x1f   : > { %1136 = vmatprep.subr.bf16.mxu0 %v1216_v13  ;;  %1174 = vmatpush3.bf16.msra.mxu1 %v1217_v14 }
  0x20   : > { %1167 = vmatprep.subr.bf16.mxu1 %v1218_v15 }
  0x22   : > { %1137 = vmatpush3.bf16.msra.mxu0 %v1216_v13 }
  0x23   : > { %1138 = vmatprep.subr.bf16.mxu0 %v1217_v14  ;;  %1175 = vmatpush3.bf16.msra.mxu1 %v1218_v15 }
  0x24   : > { %1168 = vmatprep.subr.bf16.mxu1 %v1219_v16 }
  0x25   : > { %1123 = vmatmul.mubr.msk.bf16.gmra.mxu0 %vm298_vm0, %v1210_v7 }
  0x26   : > { %1126 = vmatprep.mubr.msk.bf16.mxu0 %vm298_vm0, %v1211_v8  ;;  %1139 = vmatpush3.bf16.msra.mxu0 %v1217_v14 }
  0x27   : > { %1140 = vmatprep.subr.bf16.mxu0 %v1218_v15  ;;  %1176 = vmatpush3.bf16.msra.mxu1 %v1219_v16 }
  0x28   : > { %1169 = vmatprep.subr.bf16.mxu1 %v1220_v17 }
  0x2a   : > { %1141 = vmatpush3.bf16.msra.mxu0 %v1218_v15 }
  0x2b   : > { %1142 = vmatprep.subr.bf16.mxu0 %v1219_v16  ;;  %1177 = vmatpush3.bf16.msra.mxu1 %v1220_v17 }
  0x2d   : > { %1127 = vmatmul.mubr.msk.bf16.gmra.mxu0 %vm298_vm0, %v1212_v9 }
  0x2e   : > { %1143 = vmatpush3.bf16.msra.mxu0 %v1219_v16 }
  0x2f   : > { %1144 = vmatprep.subr.bf16.mxu0 %v1220_v17 }
  0x32   : > { %1145 = vmatpush3.bf16.msra.mxu0 %v1220_v17 }
  0xd5   : > { %v1116_v20 = vpop.f32.mrf.mxu0 }
  0xd6   : > { %v1392_v21 = vadd.f32 %v1116_v20, %v1389_v19 }
  0xd7   : > { %v453_v22 = vpop.f32.mrf.mxu0 }
  0xd8   : > { %v534_v23 = vmul.f32 0.044715, %v1392_v21  ;;  %v1396_v24 = vadd.f32 %v1389_v19, %v453_v22 }
  0xd9   : > { %v1117_v25 = vpop.f32.mrf.mxu0 }
  0xda   : > { %v550_v26 = vmul.f32 %v534_v23, %v1392_v21  ;;  %v532_v27 = vmul.f32 0.044715, %v1396_v24  ;;  %v1401_v28 = vadd.f32 %v1117_v25, %v1389_v19 }
  0xdb   : > { %v456_v29 = vpop.f32.mrf.mxu0 }
  0xdc   : > { %v566_v30 = vmul.f32 %v550_v26, %v1392_v21  ;;  %v548_v31 = vmul.f32 %v532_v27, %v1396_v24  ;;  %v535_v32 = vmul.f32 0.044715, %v1401_v28  ;;  %v1407_v33 = vadd.f32 %v1389_v19, %v456_v29 }
  0xdd   : > { %v1120_v34 = vpop.f32.mrf.mxu0 }
  0xde   : > { %v582_v35 = vadd.f32 %v566_v30, %v1392_v21  ;;  %v564_v36 = vmul.f32 %v548_v31, %v1396_v24  ;;  %v551_v37 = vmul.f32 %v535_v32, %v1401_v28  ;;  %v1413_v38 = vadd.f32 %v1120_v34, %v1389_v19 }
  0xdf   : > { %v533_v39 = vmul.f32 0.044715, %v1407_v33  ;;  %v469_v40 = vpop.f32.mrf.mxu0 }
  0xe0   : > { %v598_v41 = vmul.f32 0.7978846, %v582_v35  ;;  %v567_v42 = vmul.f32 %v551_v37, %v1401_v28  ;;  %v538_v43 = vmul.f32 0.044715, %v1413_v38  ;;  %v1419_v44 = vadd.f32 %v1389_v19, %v469_v40 }
  0xe1   : > { %v549_v45 = vmul.f32 %v533_v39, %v1407_v33  ;;  %v1121_v46 = vpop.f32.mrf.mxu0  ;;  %v580_v47 = vadd.f32 %v564_v36, %v1396_v24  ;;  %v518_v35 = vmul.f32 0.5, %v1392_v21  ;;  %v516_v21 = vmul.f32 0.5, %v1396_v24 }
  0xe2   : > { %v583_v48 = vadd.f32 %v567_v42, %v1401_v28  ;;  %v554_v49 = vmul.f32 %v538_v43, %v1413_v38  ;;  %v536_v50 = vmul.f32 0.044715, %v1419_v44  ;;  %1221 = vtanh.f32 %v598_v41 }
  0xe3   : > { %v565_v51 = vmul.f32 %v549_v45, %v1407_v33  ;;  %v1428_v52 = vadd.f32 %v1121_v46, %v1389_v19  ;;  %v472_v53 = vpop.f32.mrf.mxu0  ;;  %v596_v54 = vmul.f32 0.7978846, %v580_v47  ;;  %v519_v46 = vmul.f32 0.5, %v1401_v28 }
  0xe4   : > { %v599_v55 = vmul.f32 0.7978846, %v583_v48  ;;  %v570_v56 = vmul.f32 %v554_v49, %v1413_v38  ;;  %v1432_v57 = vadd.f32 %v1389_v19, %v472_v53  ;;  %v552_v58 = vmul.f32 %v536_v50, %v1419_v44 }
  0xe5   : > { %v539_v59 = vmul.f32 0.044715, %v1428_v52  ;;  %v1124_v60 = vpop.f32.mrf.mxu0  ;;  %v581_v61 = vadd.f32 %v565_v51, %v1407_v33  ;;  %1223 = vtanh.f32 %v596_v54  ;;  %v517_v54 = vmul.f32 0.5, %v1407_v33 }
  0xe6   : > { %1225 = vtanh.f32 %v599_v55  ;;  %v537_v62 = vmul.f32 0.044715, %v1432_v57  ;;  %v1439_v63 = vadd.f32 %v1124_v60, %v1389_v19  ;;  %v568_v3 = vmul.f32 %v552_v58, %v1419_v44 }
  0xe7   : > { %v555_v0 = vmul.f32 %v539_v59, %v1428_v52  ;;  %v485_v1 = vpop.f32.mrf.mxu0  ;;  %v597_v2 = vmul.f32 0.7978846, %v581_v61  ;;  %v586_v4 = vadd.f32 %v570_v56, %v1413_v38 }
  0xe8   : > { %v542_v5 = vmul.f32 0.044715, %v1439_v63  ;;  %v1446_v6 = vadd.f32 %v1389_v19, %v485_v1  ;;  %v553_v7 = vmul.f32 %v537_v62, %v1432_v57  ;;  %v584_v10 = vadd.f32 %v568_v3, %v1419_v44 }
  0xe9   : > { %v571_v8 = vmul.f32 %v555_v0, %v1428_v52  ;;  %v1125_v9 = vpop.f32.mrf.mxu0  ;;  %1227 = vtanh.f32 %v597_v2  ;;  %v602_v11 = vmul.f32 0.7978846, %v586_v4 }
  0xea   : > { %v558_v12 = vmul.f32 %v542_v5, %v1439_v63  ;;  %v540_v13 = vmul.f32 0.044715, %v1446_v6  ;;  %v1454_v14 = vadd.f32 %v1125_v9, %v1389_v19  ;;  %v569_v15 = vmul.f32 %v553_v7, %v1432_v57 }
  0xeb   : > { %v488_v16 = vpop.f32.mrf.mxu0  ;;  %v600_v17 = vmul.f32 0.7978846, %v584_v10  ;;  %v587_v18 = vadd.f32 %v571_v8, %v1428_v52  ;;  %1229 = vtanh.f32 %v602_v11 }
  0xec   : > { %v574_v20 = vmul.f32 %v558_v12, %v1439_v63  ;;  %v556_v22 = vmul.f32 %v540_v13, %v1446_v6  ;;  %v543_v23 = vmul.f32 0.044715, %v1454_v14  ;;  %v1462_v25 = vadd.f32 %v1389_v19, %v488_v16 }
  0xed   : > { %v1128_v26 = vpop.f32.mrf.mxu0  ;;  %v585_v27 = vadd.f32 %v569_v15, %v1432_v57  ;;  %1231 = vtanh.f32 %v600_v17  ;;  %v603_v29 = vmul.f32 0.7978846, %v587_v18 }
  0xee   : > { %v572_v30 = vmul.f32 %v556_v22, %v1446_v6  ;;  %v559_v31 = vmul.f32 %v543_v23, %v1454_v14  ;;  %v541_v32 = vmul.f32 0.044715, %v1462_v25  ;;  %v1469_v34 = vadd.f32 %v1128_v26, %v1389_v19 }
  0xef   : > { %v501_v36 = vpop.f32.mrf.mxu0  ;;  %v601_v37 = vmul.f32 0.7978846, %v585_v27  ;;  %1233 = vtanh.f32 %v603_v29  ;;  %v590_v39 = vadd.f32 %v574_v20, %v1439_v63  ;;  %v1222_v40 = vpop.eup %1221 }
  0xf0   : > { %v575_v41 = vmul.f32 %v559_v31, %v1454_v14  ;;  %v557_v42 = vmul.f32 %v541_v32, %v1462_v25  ;;  %v546_v43 = vmul.f32 0.044715, %v1469_v34  ;;  %v1477_v45 = vadd.f32 %v1389_v19, %v501_v36 }
  0xf1   : > { %v1129_v47 = vpop.f32.mrf.mxu0  ;;  %1235 = vtanh.f32 %v601_v37  ;;  %v588_v48 = vadd.f32 %v572_v30, %v1446_v6  ;;  %v630_v58 = vadd.f32 1.0, %v1222_v40  ;;  %v606_v24 = vmul.f32 0.7978846, %v590_v39 }
  0xf2   : > { %v1224_v49 = vpop.eup %1223  ;;  %v573_v50 = vmul.f32 %v557_v42, %v1462_v25  ;;  %v544_v51 = vmul.f32 0.044715, %v1477_v45  ;;  %v1485_v53 = vadd.f32 %v1129_v47, %v1389_v19  ;;  %v591_v59 = vadd.f32 %v575_v41, %v1454_v14 }
  0xf3   : > { %v1226_v55 = vpop.eup %1225  ;;  %v504_v56 = vpop.f32.mrf.mxu0  ;;  %v604_v28 = vmul.f32 0.7978846, %v588_v48  ;;  %v562_v60 = vmul.f32 %v546_v43, %v1469_v34  ;;  %v628_v1 = vadd.f32 1.0, %v1224_v49  ;;  %v646_v18 = vmul.f32 %v630_v58, %v518_v35 }
  0xf4   : > { %v560_v61 = vmul.f32 %v544_v51, %v1477_v45  ;;  %v547_v62 = vmul.f32 0.044715, %v1485_v53  ;;  %v1493_v0 = vadd.f32 %v1389_v19, %v504_v56  ;;  %v631_v2 = vadd.f32 1.0, %v1226_v55 }
  0xf5   : > { %v589_v33 = vadd.f32 %v573_v50, %v1462_v25  ;;  %1237 = vtanh.f32 %v604_v28  ;;  %v607_v8 = vmul.f32 0.7978846, %v591_v59  ;;  %v578_v19 = vmul.f32 %v562_v60, %v1469_v34 }
  0xf6   : > { %v1228_v3 = vpop.eup %1227  ;;  %v576_v4 = vmul.f32 %v560_v61, %v1477_v45  ;;  %v563_v5 = vmul.f32 %v547_v62, %v1485_v53  ;;  %v545_v7 = vmul.f32 0.044715, %v1493_v0  ;;  %v647_v10 = vmul.f32 %v631_v2, %v519_v46 }
  0xf7   : > { %v629_v9 = vadd.f32 1.0, %v1228_v3  ;;  %v605_v11 = vmul.f32 0.7978846, %v589_v33  ;;  %1239 = vtanh.f32 %v606_v24  ;;  %v644_v16 = vmul.f32 %v628_v1, %v516_v21 }
  0xf8   : > { %v1230_v12 = vpop.eup %1229  ;;  %v579_v13 = vmul.f32 %v563_v5, %v1485_v53  ;;  %v561_v15 = vmul.f32 %v545_v7, %v1493_v0  ;;  %1241 = vtanh.f32 %v607_v8  ;;  %v592_v23 = vadd.f32 %v576_v4, %v1477_v45 }
  0xf9   : > { %v645_v17 = vmul.f32 %v629_v9, %v517_v54  ;;  %1243 = vtanh.f32 %v605_v11  ;;  %v661_v27 = vpack.c.bf16 %v647_v10, %v646_v18  ;;  %v594_v32 = vadd.f32 %v578_v19, %v1469_v34 }
  0xfa   : > { %v1232_v20 = vpop.eup %1231  ;;  %v577_v22 = vmul.f32 %v561_v15, %v1493_v0  ;;  %v608_v31 = vmul.f32 0.7978846, %v592_v23  ;;  %v595_v36 = vadd.f32 %v579_v13, %v1485_v53  ;;  %v523_v35 = vmul.f32 0.5, %v1428_v52 }
  0xfb   : > { %v660_v26 = vpack.c.bf16 %v645_v17, %v644_v16  ;;  %v632_v37 = vadd.f32 1.0, %v1232_v20  ;;  %v634_v39 = vadd.f32 1.0, %v1230_v12  ;;  %v610_v43 = vmul.f32 0.7978846, %v594_v32 }
  0xfc   : > { %v1234_v29 = vpop.eup %1233  ;;  %v593_v30 = vadd.f32 %v577_v22, %v1493_v0  ;;  %1245 = vtanh.f32 %v608_v31  ;;  %v611_v46 = vmul.f32 0.7978846, %v595_v36  ;;  %v520_v47 = vmul.f32 0.5, %v1419_v44  ;;  %v671_v31 = vld [vmem:[#allocation2 + $0x18] sm:$0xff]  ;;  %v669_v36 = vld [vmem:[#allocation2 + $0x8] sm:$0xff] }
  0xfd   : > { %1146 = vmatprep.mubr.bf16.mxu0 %v660_v26  ;;  %v635_v40 = vadd.f32 1.0, %v1234_v29  ;;  %v521_v21 = vmul.f32 0.5, %v1432_v57  ;;  %v522_v49 = vmul.f32 0.5, %v1413_v38  ;;  %v527_v57 = vmul.f32 0.5, %v1454_v14 }
  0xfe   : > { %v1236_v41 = vpop.eup %1235  ;;  %1147 = vmatmul.mubr.bf16.vlgmr.msra.gmra.mxu0 %v661_v27  ;;  %v609_v42 = vmul.f32 0.7978846, %v593_v30  ;;  %v648_v51 = vmul.f32 %v632_v37, %v520_v47  ;;  %v524_v61 = vmul.f32 0.5, %v1446_v6  ;;  %v525_v62 = vmul.f32 0.5, %v1462_v25 }
  0xff   : > { %v633_v48 = vadd.f32 1.0, %v1236_v41  ;;  %v651_v50 = vmul.f32 %v635_v40, %v523_v35  ;;  %v650_v55 = vmul.f32 %v634_v39, %v522_v49  ;;  %v526_v2 = vmul.f32 0.5, %v1439_v63  ;;  %v674_v35 = vld [vmem:[#allocation2 + $0x30] sm:$0xff]  ;;  %v1526_v40 = vld [vmem:[%s1607_s4] ss:$0 sm:$0xff] }
 0x100   : > { %1247 = vtanh.f32 %v609_v42  ;;  %v528_v12 = vmul.f32 0.5, %v1477_v45  ;;  %v529_v6 = vmul.f32 0.5, %v1493_v0  ;;  %v530_v63 = vmul.f32 0.5, %v1469_v34  ;;  %v670_v45 = vld [vmem:[#allocation2 + $0x10] sm:$0xff]  ;;  %v668_v0 = vld [vmem:[#allocation2] sm:$0xff] }
 0x101   : > { %v649_v54 = vmul.f32 %v633_v48, %v521_v21  ;;  %1249 = vtanh.f32 %v610_v43  ;;  %v663_v28 = vpack.c.bf16 %v651_v50, %v650_v55  ;;  %v531_v17 = vmul.f32 0.5, %v1485_v53  ;;  %v672_v42 = vld [vmem:[#allocation2 + $0x20] sm:$0xff]  ;;  %v675_v21 = vld [vmem:[#allocation2 + $0x38] sm:$0xff] }
 0x102   : > { %v1238_v52 = vpop.eup %1237  ;;  %1251 = vtanh.f32 %v611_v46 }
 0x103   : > { %v662_v56 = vpack.c.bf16 %v649_v54, %v648_v51  ;;  %v636_v24 = vadd.f32 1.0, %v1238_v52  ;;  %v673_v54 = vld [vmem:[#allocation2 + $0x28] sm:$0xff] }
 0x104   : > { %v1240_v58 = vpop.eup %1239 }
 0x105   : > { %v1242_v59 = vpop.eup %1241  ;;  %1150 = vmatprep.mubr.bf16.mxu1 %v662_v56  ;;  %v638_v60 = vadd.f32 1.0, %v1240_v58  ;;  %v652_v3 = vmul.f32 %v636_v24, %v524_v61 }
 0x106   : > { %v1244_v44 = vpop.eup %1243  ;;  %1151 = vmatmul.mubr.bf16.vlgmr.msra.gmra.mxu1 %v663_v28  ;;  %v639_v38 = vadd.f32 1.0, %v1242_v59  ;;  %v678_v28 = vld [vmem:[#allocation2 + $0x50] sm:$0xff] }
 0x107   : > { %v637_v1 = vadd.f32 1.0, %v1244_v44  ;;  %v654_v5 = vmul.f32 %v638_v60, %v526_v2  ;;  %v676_v60 = vld [vmem:[#allocation2 + $0x40] sm:$0xff]  ;;  %v679_v2 = vld [vmem:[#allocation2 + $0x58] sm:$0xff] }
 0x108   : > { %v655_v33 = vmul.f32 %v639_v38, %v527_v57 }
 0x109   : > { %v653_v4 = vmul.f32 %v637_v1, %v525_v62  ;;  %v1246_v7 = vpop.eup %1245 }
 0x10a   : > { %v665_v9 = vpack.c.bf16 %v655_v33, %v654_v5  ;;  %v640_v10 = vadd.f32 1.0, %v1246_v7  ;;  %v677_v7 = vld [vmem:[#allocation2 + $0x48] sm:$0xff] }
 0x10b   : > { %v664_v8 = vpack.c.bf16 %v653_v4, %v652_v3 }
 0x10c   : > { %v656_v15 = vmul.f32 %v640_v10, %v528_v12 }
 0x10d   : > { %v1248_v11 = vpop.eup %1247  ;;  %1154 = vmatprep.mubr.bf16.mxu1 %v664_v8 }
 0x10e   : > { %v1250_v14 = vpop.eup %1249  ;;  %1155 = vmatmul.mubr.bf16.gmra.mxu1 %v665_v9  ;;  %v641_v25 = vadd.f32 1.0, %v1248_v11 }
 0x10f   : > { %v1252_v19 = vpop.eup %1251  ;;  %v642_v13 = vadd.f32 1.0, %v1250_v14  ;;  %v682_v14 = vld [vmem:[#allocation2 + $0x70] sm:$0xff] }
 0x110   : > { %v657_v16 = vmul.f32 %v641_v25, %v529_v6  ;;  %v643_v18 = vadd.f32 1.0, %v1252_v19 }
 0x111   : > { %v658_v22 = vmul.f32 %v642_v13, %v530_v63  ;;  %v680_v63 = vld [vmem:[#allocation2 + $0x60] sm:$0xff] }
 0x112   : > { %v666_v20 = vpack.c.bf16 %v657_v16, %v656_v15  ;;  %v659_v23 = vmul.f32 %v643_v18, %v531_v17  ;;  %v683_v18 = vld [vmem:[#allocation2 + $0x78] sm:$0xff] }
 0x114   : > { %1158 = vmatprep.mubr.bf16.mxu1 %v666_v20  ;;  %v667_v26 = vpack.c.bf16 %v659_v23, %v658_v22 }
 0x116   : > { %1159 = vmatmul.mubr.bf16.gmra.mxu1 %v667_v26 }
 0x1be   : > { %v1148_v27 = vpop.f32.mrf.mxu0 }
 0x1bf   : > { %v847_v29 = vadd.f32 %v1148_v27, %v670_v45  ;;  %v681_v45 = vld [vmem:[#allocation2 + $0x68] sm:$0xff] }
 0x1c0   : > { %v782_v30 = vpop.f32.mrf.mxu0 }
 0x1c1   : > { %863 = vst.msk [vmem:[#allocation2 + $0x10] sm:$0xff] %vm298_vm0, %v847_v29  ;;  %v845_v34 = vadd.f32 %v782_v30, %v668_v0 }
 0x1c2   : > { %v1149_v32 = vpop.f32.mrf.mxu0 }
 0x1c3   : > { %861 = vst.msk [vmem:[#allocation2] sm:$0xff] %vm298_vm0, %v845_v34  ;;  %v848_v53 = vadd.f32 %v1149_v32, %v671_v31 }
 0x1c4   : > { %v785_v37 = vpop.f32.mrf.mxu0 }
 0x1c5   : > { %864 = vst.msk [vmem:[#allocation2 + $0x18] sm:$0xff] %vm298_vm0, %v848_v53  ;;  %v846_v39 = vadd.f32 %v785_v37, %v669_v36 }
 0x1c6   : > { %v1152_v41 = vpop.f32.mrf.mxu1 }
 0x1c7   : > { %862 = vst.msk [vmem:[#allocation2 + $0x8] sm:$0xff] %vm298_vm0, %v846_v39  ;;  %v851_v43 = vadd.f32 %v1152_v41, %v674_v35 }
 0x1c8   : > { %v882_v46 = vld [vmem:[#allocation2 + $0x10] sm:$0xff]  ;;  %v798_v47 = vpop.f32.mrf.mxu1 }
 0x1c9   : > { %v905_v48 = vadd.f32 %v1526_v40, %v882_v46  ;;  %867 = vst.msk [vmem:[#allocation2 + $0x30] sm:$0xff] %vm298_vm0, %v851_v43  ;;  %v849_v49 = vadd.f32 %v798_v47, %v672_v42 }
 0x1ca   : > { %v880_v50 = vld [vmem:[#allocation2] sm:$0xff]  ;;  %v1153_v51 = vpop.f32.mrf.mxu1 }
 0x1cb   : > { %921 = vst.msk [vmem:[%s1532_s8 + $0x10] sm:$0xff] %vm298_vm0, %v905_v48  ;;  %v903_v52 = vadd.f32 %v1526_v40, %v880_v50  ;;  %865 = vst.msk [vmem:[#allocation2 + $0x20] sm:$0xff] %vm298_vm0, %v849_v49  ;;  %v852_v55 = vadd.f32 %v1153_v51, %v675_v21 }
 0x1cc   : > { %v883_v56 = vld [vmem:[#allocation2 + $0x18] sm:$0xff]  ;;  %v801_v58 = vpop.f32.mrf.mxu1 }
 0x1cd   : > { %919 = vst.msk [vmem:[%s1532_s8] sm:$0xff] %vm298_vm0, %v903_v52  ;;  %v906_v59 = vadd.f32 %v1526_v40, %v883_v56  ;;  %868 = vst.msk [vmem:[#allocation2 + $0x38] sm:$0xff] %vm298_vm0, %v852_v55  ;;  %v850_v24 = vadd.f32 %v801_v58, %v673_v54 }
 0x1ce   : > { %v881_v44 = vld [vmem:[#allocation2 + $0x8] sm:$0xff]  ;;  %v1156_v57 = vpop.f32.mrf.mxu1 }
 0x1cf   : > { %922 = vst.msk [vmem:[%s1532_s8 + $0x18] sm:$0xff] %vm298_vm0, %v906_v59  ;;  %v904_v38 = vadd.f32 %v1526_v40, %v881_v44  ;;  %866 = vst.msk [vmem:[#allocation2 + $0x28] sm:$0xff] %vm298_vm0, %v850_v24  ;;  %v855_v61 = vadd.f32 %v1156_v57, %v678_v28 }
 0x1d0   : > { %v886_v62 = vld [vmem:[#allocation2 + $0x30] sm:$0xff]  ;;  %v814_v1 = vpop.f32.mrf.mxu1 }
 0x1d1   : > { %920 = vst.msk [vmem:[%s1532_s8 + $0x8] sm:$0xff] %vm298_vm0, %v904_v38  ;;  %v909_v33 = vadd.f32 %v1526_v40, %v886_v62  ;;  %871 = vst.msk [vmem:[#allocation2 + $0x50] sm:$0xff] %vm298_vm0, %v855_v61  ;;  %v853_v3 = vadd.f32 %v814_v1, %v676_v60 }
 0x1d2   : > { %v884_v4 = vld [vmem:[#allocation2 + $0x20] sm:$0xff]  ;;  %v1157_v5 = vpop.f32.mrf.mxu1 }
 0x1d3   : > { %925 = vst.msk [vmem:[%s1532_s8 + $0x30] sm:$0xff] %vm298_vm0, %v909_v33  ;;  %v907_v8 = vadd.f32 %v1526_v40, %v884_v4  ;;  %869 = vst.msk [vmem:[#allocation2 + $0x40] sm:$0xff] %vm298_vm0, %v853_v3  ;;  %v856_v9 = vadd.f32 %v1157_v5, %v679_v2 }
 0x1d4   : > { %v887_v10 = vld [vmem:[#allocation2 + $0x38] sm:$0xff]  ;;  %v817_v11 = vpop.f32.mrf.mxu1 }
 0x1d5   : > { %923 = vst.msk [vmem:[%s1532_s8 + $0x20] sm:$0xff] %vm298_vm0, %v907_v8  ;;  %v910_v12 = vadd.f32 %v1526_v40, %v887_v10  ;;  %872 = vst.msk [vmem:[#allocation2 + $0x58] sm:$0xff] %vm298_vm0, %v856_v9  ;;  %v854_v6 = vadd.f32 %v817_v11, %v677_v7 }
 0x1d6   : > { %v885_v25 = vld [vmem:[#allocation2 + $0x28] sm:$0xff]  ;;  %v1160_v19 = vpop.f32.mrf.mxu1 }
 0x1d7   : > { %926 = vst.msk [vmem:[%s1532_s8 + $0x38] sm:$0xff] %vm298_vm0, %v910_v12  ;;  %v908_v13 = vadd.f32 %v1526_v40, %v885_v25  ;;  %870 = vst.msk [vmem:[#allocation2 + $0x48] sm:$0xff] %vm298_vm0, %v854_v6  ;;  %v859_v15 = vadd.f32 %v1160_v19, %v682_v14 }
 0x1d8   : > { %v890_v16 = vld [vmem:[#allocation2 + $0x50] sm:$0xff]  ;;  %v830_v17 = vpop.f32.mrf.mxu1 }
 0x1d9   : > { %924 = vst.msk [vmem:[%s1532_s8 + $0x28] sm:$0xff] %vm298_vm0, %v908_v13  ;;  %v913_v20 = vadd.f32 %v1526_v40, %v890_v16  ;;  %875 = vst.msk [vmem:[#allocation2 + $0x70] sm:$0xff] %vm298_vm0, %v859_v15  ;;  %v857_v22 = vadd.f32 %v830_v17, %v680_v63 }
 0x1da   : > { %v888_v23 = vld [vmem:[#allocation2 + $0x40] sm:$0xff]  ;;  %v1161_v26 = vpop.f32.mrf.mxu1 }
 0x1db   : > { %929 = vst.msk [vmem:[%s1532_s8 + $0x50] sm:$0xff] %vm298_vm0, %v913_v20  ;;  %v911_v27 = vadd.f32 %v1526_v40, %v888_v23  ;;  %873 = vst.msk [vmem:[#allocation2 + $0x60] sm:$0xff] %vm298_vm0, %v857_v22  ;;  %v860_v0 = vadd.f32 %v1161_v26, %v683_v18 }
 0x1dc   : > { %v891_v29 = vld [vmem:[#allocation2 + $0x58] sm:$0xff]  ;;  %v833_v30 = vpop.f32.mrf.mxu1 }
 0x1dd   : > { %927 = vst.msk [vmem:[%s1532_s8 + $0x40] sm:$0xff] %vm298_vm0, %v911_v27  ;;  %v914_v31 = vadd.f32 %v1526_v40, %v891_v29  ;;  %876 = vst.msk [vmem:[#allocation2 + $0x78] sm:$0xff] %vm298_vm0, %v860_v0  ;;  %v858_v34 = vadd.f32 %v833_v30, %v681_v45 }
 0x1de   : > { %v889_v32 = vld [vmem:[#allocation2 + $0x48] sm:$0xff] }
 0x1df   : > { %930 = vst.msk [vmem:[%s1532_s8 + $0x58] sm:$0xff] %vm298_vm0, %v914_v31  ;;  %v912_v36 = vadd.f32 %v1526_v40, %v889_v32  ;;  %874 = vst.msk [vmem:[#allocation2 + $0x68] sm:$0xff] %vm298_vm0, %v858_v34 }
 0x1e0   : > { %v894_v53 = vld [vmem:[#allocation2 + $0x70] sm:$0xff] }
 0x1e1   : > { %928 = vst.msk [vmem:[%s1532_s8 + $0x48] sm:$0xff] %vm298_vm0, %v912_v36  ;;  %v917_v37 = vadd.f32 %v1526_v40, %v894_v53 }
 0x1e2   : > { %v892_v35 = vld [vmem:[#allocation2 + $0x60] sm:$0xff] }
 0x1e3   : > { %933 = vst.msk [vmem:[%s1532_s8 + $0x70] sm:$0xff] %vm298_vm0, %v917_v37  ;;  %v915_v39 = vadd.f32 %v1526_v40, %v892_v35 }
 0x1e4   : > { %v895_v41 = vld [vmem:[#allocation2 + $0x78] sm:$0xff] }
 0x1e5   : > { %931 = vst.msk [vmem:[%s1532_s8 + $0x60] sm:$0xff] %vm298_vm0, %v915_v39  ;;  %v918_v42 = vadd.f32 %v1526_v40, %v895_v41 }
 0x1e6   : > { %v893_v43 = vld [vmem:[#allocation2 + $0x68] sm:$0xff] }
 0x1e7   : > { %934 = vst.msk [vmem:[%s1532_s8 + $0x78] sm:$0xff] %vm298_vm0, %v918_v42  ;;  %v916_v46 = vadd.f32 %v1526_v40, %v893_v43 }
 0x1e9   : > { %932 = vst.msk [vmem:[%s1532_s8 + $0x68] sm:$0xff] %vm298_vm0, %v916_v46 }
 0x1ea PF: > { %s15_s20 = sadd.s32 1, %s1275_s20   ;;  %s1609_s18 = smov %s1271_s19 }
 0x1eb   : > { %p12_p5 = scmp.ge.s32.totalorder %s15_s20, 4   ;;  %s1610_s19 = smov %s1612_s21 }
 0x1ed   :  { %14 = sbr.rel (!%p12_p5) target bundleno = 2 (0x2), region = 87 }

// kernel: tpu_custom_call.1
= control target key start
LH: loop header
LB: loop body
LE: loop exit
PB: predicated region body
PF: predicated region fallthrough
CT: control target
= control target key end

     0   :  { %s1308_s18 = smov 0   ;;  %s1310_s19 = smov 0   ;;  %s1603_s0 = inlined_call_operand.vmem [shape: bf16[256,32], index: 0, kind: input, shape index: {}]   ;;  %s1604_s1 = inlined_call_operand.vmem [shape: bf16[32,128], index: 1, kind: input, shape index: {}]   ;;  %s1605_s2 = inlined_call_operand.vmem [shape: f32[1,128], index: 2, kind: input, shape index: {}]   ;;  %s1606_s3 = inlined_call_operand.vmem [shape: bf16[128,32], index: 3, kind: input, shape index: {}]   ;;  %s1607_s4 = inlined_call_operand.vmem [shape: f32[1,32], index: 4, kind: input, shape index: {}]   ;;  %s1608_s5 = inlined_call_operand.vmem [shape: f32[256,32], index: 5, kind: output, shape index: {}]  }
   0x1   :  { %s1312_s20 = smov 0  }
   0x2 LB: > { %s27_s21 = sadd.s32 1, %s1271_s19  ;;  %p1049_p0 = scmp.ge.s32.totalorder %s1275_s20, 1  ;;  %s1275_s20 = sphi %s1312_s20, %s15_s20   ;;  %s1271_s19 = sphi %s1310_s19, %s1610_s19   ;;  %s1267_s18 = sphi %s1308_s18, %s1609_s18  }
   0x3   : > { %p29_p1 = scmp.ge.s32.totalorder %s27_s21, 2  ;;  %p228_p2 = scmp.lt.s32.totalorder %s1275_s20, 3 }
   0x5   : > { %s1612_s21 = smov (%p29_p1, %s27_s21), 0  ;;  %p229_p3 = pnand %p1049_p0, %p228_p2 }
   0x6   : > { %s1050_s24 = sshll.u32 (!%p229_p3), %s1267_s18, 4 }
   0x7   : > { %232 = sbr.rel (%p229_p3) target bundleno = 490 (0x1ea), region = 40  ;;  %p269_p4 = scmp.lt.s32.totalorder (!%p229_p3), %s1050_s24, 31 }
   0xc   : > { %v1203_v0 = vld [vmem:[%s1604_s1 + $0x8] sm:$0xff]   ;;  %v1204_v1 = vld [vmem:[%s1604_s1] sm:$0xff]   ;;  %s1614_s24 = smov (!%p269_p4, %s1050_s24), 31  ;;  %vm298_vm0 = vcmask 261120   ;;  %v1213_v10 = vld [vmem:[%s1606_s3 + $0x38] sm:$0xff]   ;;  %v1277_v18 = vmov 0.0  }
   0xd   : > { %1110 = vmatprep.subr.bf16.mxu0 %v1203_v0  ;;  %s1051_s27 = sshll.u32 %s1614_s24, 2  ;;  %1162 = vmatprep.subr.bf16.mxu1 %v1213_v10  ;;  %v1214_v11 = vld [vmem:[%s1606_s3 + $0x30] sm:$0xff]   ;;  %v1215_v12 = vld [vmem:[%s1606_s3 + $0x28] sm:$0xff]   ;;  %v1216_v13 = vld [vmem:[%s1606_s3 + $0x20] sm:$0xff]   ;;  %301 = vst.msk [vmem:[#allocation2 + $0x10] sm:$0xff] %vm298_vm0, %v1277_v18  ;;  %s1053_s28 = sshll.u32 %s1614_s24, 3 }
   0xe   : > { %1111 = vmatpush3.bf16.msra.mxu0 %v1203_v0  ;;  %s272_s30 = scalar_lea.vmem %s1603_s0, %s1051_s27  ;;  %1170 = vmatpush3.bf16.msra.mxu1 %v1213_v10  ;;  %v1217_v14 = vld [vmem:[%s1606_s3 + $0x18] sm:$0xff]   ;;  %v1218_v15 = vld [vmem:[%s1606_s3 + $0x10] sm:$0xff]   ;;  %v1219_v16 = vld [vmem:[%s1606_s3 + $0x8] sm:$0xff]   ;;  %299 = vst.msk [vmem:[#allocation2] sm:$0xff] %vm298_vm0, %v1277_v18  ;;  %s1532_s8 = scalar_lea.vmem %s1608_s5, %s1053_s28 }
   0xf   : > { %1112 = vmatprep.subr.bf16.mxu0 %v1204_v1  ;;  %v1205_v2 = vld [vmem:[%s272_s30] sm:$0xff]   ;;  %v1206_v3 = vld [vmem:[%s272_s30 + $0x8] sm:$0xff]   ;;  %v1207_v4 = vld [vmem:[%s272_s30 + $0x10] sm:$0xff]   ;;  %1163 = vmatprep.subr.bf16.mxu1 %v1214_v11  ;;  %300 = vst.msk [vmem:[#allocation2 + $0x8] sm:$0xff] %vm298_vm0, %v1277_v18 }
  0x10   : > { %1114 = vmatprep.mubr.msk.bf16.mxu0 %vm298_vm0, %v1205_v2  ;;  %v1208_v5 = vld [vmem:[%s272_s30 + $0x18] sm:$0xff]   ;;  %v1209_v6 = vld [vmem:[%s272_s30 + $0x20] sm:$0xff]   ;;  %v1210_v7 = vld [vmem:[%s272_s30 + $0x28] sm:$0xff]   ;;  %302 = vst.msk [vmem:[#allocation2 + $0x18] sm:$0xff] %vm298_vm0, %v1277_v18 }
  0x11   : > { %v1211_v8 = vld [vmem:[%s272_s30 + $0x30] sm:$0xff]   ;;  %v1212_v9 = vld [vmem:[%s272_s30 + $0x38] sm:$0xff]   ;;  %v1220_v17 = vld [vmem:[%s1606_s3] sm:$0xff]   ;;  %303 = vst.msk [vmem:[#allocation2 + $0x20] sm:$0xff] %vm298_vm0, %v1277_v18 }
  0x12   : > { %1113 = vmatpush3.bf16.msra.mxu0 %v1204_v1  ;;  %1171 = vmatpush3.bf16.msra.mxu1 %v1214_v11  ;;  %304 = vst.msk [vmem:[#allocation2 + $0x28] sm:$0xff] %vm298_vm0, %v1277_v18  ;;  %305 = vst.msk [vmem:[#allocation2 + $0x30] sm:$0xff] %vm298_vm0, %v1277_v18  ;;  %v1389_v19 = vld [vmem:[%s1605_s2] ss:$0 sm:$0xff] }
  0x13   : > { %1130 = vmatprep.subr.bf16.mxu0 %v1213_v10  ;;  %1164 = vmatprep.subr.bf16.mxu1 %v1215_v12  ;;  %306 = vst.msk [vmem:[#allocation2 + $0x38] sm:$0xff] %vm298_vm0, %v1277_v18  ;;  %307 = vst.msk [vmem:[#allocation2 + $0x40] sm:$0xff] %vm298_vm0, %v1277_v18 }
  0x14   : > { %308 = vst.msk [vmem:[#allocation2 + $0x48] sm:$0xff] %vm298_vm0, %v1277_v18  ;;  %309 = vst.msk [vmem:[#allocation2 + $0x50] sm:$0xff] %vm298_vm0, %v1277_v18 }
  0x15   : > { %1115 = vmatmul.mubr.msk.bf16.vlgmr.msra.gmra.mxu0 %vm298_vm0, %v1206_v3  ;;  %310 = vst.msk [vmem:[#allocation2 + $0x58] sm:$0xff] %vm298_vm0, %v1277_v18  ;;  %311 = vst.msk [vmem:[#allocation2 + $0x60] sm:$0xff] %vm298_vm0, %v1277_v18 }
  0x16   : > { %1118 = vmatprep.mubr.msk.bf16.mxu0 %vm298_vm0, %v1207_v4  ;;  %1131 = vmatpush3.bf16.msra.mxu0 %v1213_v10  ;;  %312 = vst.msk [vmem:[#allocation2 + $0x68] sm:$0xff] %vm298_vm0, %v1277_v18  ;;  %313 = vst.msk [vmem:[#allocation2 + $0x70] sm:$0xff] %vm298_vm0, %v1277_v18 }
  0x17   : > { %1132 = vmatprep.subr.bf16.mxu0 %v1214_v11  ;;  %1172 = vmatpush3.bf16.msra.mxu1 %v1215_v12  ;;  %314 = vst.msk [vmem:[#allocation2 + $0x78] sm:$0xff] %vm298_vm0, %v1277_v18 }
  0x18   : > { %1165 = vmatprep.subr.bf16.mxu1 %v1216_v13 }
  0x1a   : > { %1133 = vmatpush3.bf16.msra.mxu0 %v1214_v11 }
  0x1b   : > { %1134 = vmatprep.subr.bf16.mxu0 %v1215_v12  ;;  %1173 = vmatpush3.bf16.msra.mxu1 %v1216_v13 }
  0x1c   : > { %1166 = vmatprep.subr.bf16.mxu1 %v1217_v14 }
  0x1d   : > { %1119 = vmatmul.mubr.msk.bf16.gmra.mxu0 %vm298_vm0, %v1208_v5 }
  0x1e   : > { %1122 = vmatprep.mubr.msk.bf16.mxu0 %vm298_vm0, %v1209_v6  ;;  %1135 = vmatpush3.bf16.msra.mxu0 %v1215_v12 }
  0x1f   : > { %1136 = vmatprep.subr.bf16.mxu0 %v1216_v13  ;;  %1174 = vmatpush3.bf16.msra.mxu1 %v1217_v14 }
  0x20   : > { %1167 = vmatprep.subr.bf16.mxu1 %v1218_v15 }
  0x22   : > { %1137 = vmatpush3.bf16.msra.mxu0 %v1216_v13 }
  0x23   : > { %1138 = vmatprep.subr.bf16.mxu0 %v1217_v14  ;;  %1175 = vmatpush3.bf16.msra.mxu1 %v1218_v15 }
  0x24   : > { %1168 = vmatprep.subr.bf16.mxu1 %v1219_v16 }
  0x25   : > { %1123 = vmatmul.mubr.msk.bf16.gmra.mxu0 %vm298_vm0, %v1210_v7 }
  0x26   : > { %1126 = vmatprep.mubr.msk.bf16.mxu0 %vm298_vm0, %v1211_v8  ;;  %1139 = vmatpush3.bf16.msra.mxu0 %v1217_v14 }
  0x27   : > { %1140 = vmatprep.subr.bf16.mxu0 %v1218_v15  ;;  %1176 = vmatpush3.bf16.msra.mxu1 %v1219_v16 }
  0x28   : > { %1169 = vmatprep.subr.bf16.mxu1 %v1220_v17 }
  0x2a   : > { %1141 = vmatpush3.bf16.msra.mxu0 %v1218_v15 }
  0x2b   : > { %1142 = vmatprep.subr.bf16.mxu0 %v1219_v16  ;;  %1177 = vmatpush3.bf16.msra.mxu1 %v1220_v17 }
  0x2d   : > { %1127 = vmatmul.mubr.msk.bf16.gmra.mxu0 %vm298_vm0, %v1212_v9 }
  0x2e   : > { %1143 = vmatpush3.bf16.msra.mxu0 %v1219_v16 }
  0x2f   : > { %1144 = vmatprep.subr.bf16.mxu0 %v1220_v17 }
  0x32   : > { %1145 = vmatpush3.bf16.msra.mxu0 %v1220_v17 }
  0xd5   : > { %v1116_v20 = vpop.f32.mrf.mxu0 }
  0xd6   : > { %v1392_v21 = vadd.f32 %v1116_v20, %v1389_v19 }
  0xd7   : > { %v453_v22 = vpop.f32.mrf.mxu0 }
  0xd8   : > { %v534_v23 = vmul.f32 0.044715, %v1392_v21  ;;  %v1396_v24 = vadd.f32 %v1389_v19, %v453_v22 }
  0xd9   : > { %v1117_v25 = vpop.f32.mrf.mxu0 }
  0xda   : > { %v550_v26 = vmul.f32 %v534_v23, %v1392_v21  ;;  %v532_v27 = vmul.f32 0.044715, %v1396_v24  ;;  %v1401_v28 = vadd.f32 %v1117_v25, %v1389_v19 }
  0xdb   : > { %v456_v29 = vpop.f32.mrf.mxu0 }
  0xdc   : > { %v566_v30 = vmul.f32 %v550_v26, %v1392_v21  ;;  %v548_v31 = vmul.f32 %v532_v27, %v1396_v24  ;;  %v535_v32 = vmul.f32 0.044715, %v1401_v28  ;;  %v1407_v33 = vadd.f32 %v1389_v19, %v456_v29 }
  0xdd   : > { %v1120_v34 = vpop.f32.mrf.mxu0 }
  0xde   : > { %v582_v35 = vadd.f32 %v566_v30, %v1392_v21  ;;  %v564_v36 = vmul.f32 %v548_v31, %v1396_v24  ;;  %v551_v37 = vmul.f32 %v535_v32, %v1401_v28  ;;  %v1413_v38 = vadd.f32 %v1120_v34, %v1389_v19 }
  0xdf   : > { %v533_v39 = vmul.f32 0.044715, %v1407_v33  ;;  %v469_v40 = vpop.f32.mrf.mxu0 }
  0xe0   : > { %v598_v41 = vmul.f32 0.7978846, %v582_v35  ;;  %v567_v42 = vmul.f32 %v551_v37, %v1401_v28  ;;  %v538_v43 = vmul.f32 0.044715, %v1413_v38  ;;  %v1419_v44 = vadd.f32 %v1389_v19, %v469_v40 }
  0xe1   : > { %v549_v45 = vmul.f32 %v533_v39, %v1407_v33  ;;  %v1121_v46 = vpop.f32.mrf.mxu0  ;;  %v580_v47 = vadd.f32 %v564_v36, %v1396_v24  ;;  %v518_v35 = vmul.f32 0.5, %v1392_v21  ;;  %v516_v21 = vmul.f32 0.5, %v1396_v24 }
  0xe2   : > { %v583_v48 = vadd.f32 %v567_v42, %v1401_v28  ;;  %v554_v49 = vmul.f32 %v538_v43, %v1413_v38  ;;  %v536_v50 = vmul.f32 0.044715, %v1419_v44  ;;  %1221 = vtanh.f32 %v598_v41 }
  0xe3   : > { %v565_v51 = vmul.f32 %v549_v45, %v1407_v33  ;;  %v1428_v52 = vadd.f32 %v1121_v46, %v1389_v19  ;;  %v472_v53 = vpop.f32.mrf.mxu0  ;;  %v596_v54 = vmul.f32 0.7978846, %v580_v47  ;;  %v519_v46 = vmul.f32 0.5, %v1401_v28 }
  0xe4   : > { %v599_v55 = vmul.f32 0.7978846, %v583_v48  ;;  %v570_v56 = vmul.f32 %v554_v49, %v1413_v38  ;;  %v1432_v57 = vadd.f32 %v1389_v19, %v472_v53  ;;  %v552_v58 = vmul.f32 %v536_v50, %v1419_v44 }
  0xe5   : > { %v539_v59 = vmul.f32 0.044715, %v1428_v52  ;;  %v1124_v60 = vpop.f32.mrf.mxu0  ;;  %v581_v61 = vadd.f32 %v565_v51, %v1407_v33  ;;  %1223 = vtanh.f32 %v596_v54  ;;  %v517_v54 = vmul.f32 0.5, %v1407_v33 }
  0xe6   : > { %1225 = vtanh.f32 %v599_v55  ;;  %v537_v62 = vmul.f32 0.044715, %v1432_v57  ;;  %v1439_v63 = vadd.f32 %v1124_v60, %v1389_v19  ;;  %v568_v3 = vmul.f32 %v552_v58, %v1419_v44 }
  0xe7   : > { %v555_v0 = vmul.f32 %v539_v59, %v1428_v52  ;;  %v485_v1 = vpop.f32.mrf.mxu0  ;;  %v597_v2 = vmul.f32 0.7978846, %v581_v61  ;;  %v586_v4 = vadd.f32 %v570_v56, %v1413_v38 }
  0xe8   : > { %v542_v5 = vmul.f32 0.044715, %v1439_v63  ;;  %v1446_v6 = vadd.f32 %v1389_v19, %v485_v1  ;;  %v553_v7 = vmul.f32 %v537_v62, %v1432_v57  ;;  %v584_v10 = vadd.f32 %v568_v3, %v1419_v44 }
  0xe9   : > { %v571_v8 = vmul.f32 %v555_v0, %v1428_v52  ;;  %v1125_v9 = vpop.f32.mrf.mxu0  ;;  %1227 = vtanh.f32 %v597_v2  ;;  %v602_v11 = vmul.f32 0.7978846, %v586_v4 }
  0xea   : > { %v558_v12 = vmul.f32 %v542_v5, %v1439_v63  ;;  %v540_v13 = vmul.f32 0.044715, %v1446_v6  ;;  %v1454_v14 = vadd.f32 %v1125_v9, %v1389_v19  ;;  %v569_v15 = vmul.f32 %v553_v7, %v1432_v57 }
  0xeb   : > { %v488_v16 = vpop.f32.mrf.mxu0  ;;  %v600_v17 = vmul.f32 0.7978846, %v584_v10  ;;  %v587_v18 = vadd.f32 %v571_v8, %v1428_v52  ;;  %1229 = vtanh.f32 %v602_v11 }
  0xec   : > { %v574_v20 = vmul.f32 %v558_v12, %v1439_v63  ;;  %v556_v22 = vmul.f32 %v540_v13, %v1446_v6  ;;  %v543_v23 = vmul.f32 0.044715, %v1454_v14  ;;  %v1462_v25 = vadd.f32 %v1389_v19, %v488_v16 }
  0xed   : > { %v1128_v26 = vpop.f32.mrf.mxu0  ;;  %v585_v27 = vadd.f32 %v569_v15, %v1432_v57  ;;  %1231 = vtanh.f32 %v600_v17  ;;  %v603_v29 = vmul.f32 0.7978846, %v587_v18 }
  0xee   : > { %v572_v30 = vmul.f32 %v556_v22, %v1446_v6  ;;  %v559_v31 = vmul.f32 %v543_v23, %v1454_v14  ;;  %v541_v32 = vmul.f32 0.044715, %v1462_v25  ;;  %v1469_v34 = vadd.f32 %v1128_v26, %v1389_v19 }
  0xef   : > { %v501_v36 = vpop.f32.mrf.mxu0  ;;  %v601_v37 = vmul.f32 0.7978846, %v585_v27  ;;  %1233 = vtanh.f32 %v603_v29  ;;  %v590_v39 = vadd.f32 %v574_v20, %v1439_v63  ;;  %v1222_v40 = vpop.eup %1221 }
  0xf0   : > { %v575_v41 = vmul.f32 %v559_v31, %v1454_v14  ;;  %v557_v42 = vmul.f32 %v541_v32, %v1462_v25  ;;  %v546_v43 = vmul.f32 0.044715, %v1469_v34  ;;  %v1477_v45 = vadd.f32 %v1389_v19, %v501_v36 }
  0xf1   : > { %v1129_v47 = vpop.f32.mrf.mxu0  ;;  %1235 = vtanh.f32 %v601_v37  ;;  %v588_v48 = vadd.f32 %v572_v30, %v1446_v6  ;;  %v630_v58 = vadd.f32 1.0, %v1222_v40  ;;  %v606_v24 = vmul.f32 0.7978846, %v590_v39 }
  0xf2   : > { %v1224_v49 = vpop.eup %1223  ;;  %v573_v50 = vmul.f32 %v557_v42, %v1462_v25  ;;  %v544_v51 = vmul.f32 0.044715, %v1477_v45  ;;  %v1485_v53 = vadd.f32 %v1129_v47, %v1389_v19  ;;  %v591_v59 = vadd.f32 %v575_v41, %v1454_v14 }
  0xf3   : > { %v1226_v55 = vpop.eup %1225  ;;  %v504_v56 = vpop.f32.mrf.mxu0  ;;  %v604_v28 = vmul.f32 0.7978846, %v588_v48  ;;  %v562_v60 = vmul.f32 %v546_v43, %v1469_v34  ;;  %v628_v1 = vadd.f32 1.0, %v1224_v49  ;;  %v646_v18 = vmul.f32 %v630_v58, %v518_v35 }
  0xf4   : > { %v560_v61 = vmul.f32 %v544_v51, %v1477_v45  ;;  %v547_v62 = vmul.f32 0.044715, %v1485_v53  ;;  %v1493_v0 = vadd.f32 %v1389_v19, %v504_v56  ;;  %v631_v2 = vadd.f32 1.0, %v1226_v55 }
  0xf5   : > { %v589_v33 = vadd.f32 %v573_v50, %v1462_v25  ;;  %1237 = vtanh.f32 %v604_v28  ;;  %v607_v8 = vmul.f32 0.7978846, %v591_v59  ;;  %v578_v19 = vmul.f32 %v562_v60, %v1469_v34 }
  0xf6   : > { %v1228_v3 = vpop.eup %1227  ;;  %v576_v4 = vmul.f32 %v560_v61, %v1477_v45  ;;  %v563_v5 = vmul.f32 %v547_v62, %v1485_v53  ;;  %v545_v7 = vmul.f32 0.044715, %v1493_v0  ;;  %v647_v10 = vmul.f32 %v631_v2, %v519_v46 }
  0xf7   : > { %v629_v9 = vadd.f32 1.0, %v1228_v3  ;;  %v605_v11 = vmul.f32 0.7978846, %v589_v33  ;;  %1239 = vtanh.f32 %v606_v24  ;;  %v644_v16 = vmul.f32 %v628_v1, %v516_v21 }
  0xf8   : > { %v1230_v12 = vpop.eup %1229  ;;  %v579_v13 = vmul.f32 %v563_v5, %v1485_v53  ;;  %v561_v15 = vmul.f32 %v545_v7, %v1493_v0  ;;  %1241 = vtanh.f32 %v607_v8  ;;  %v592_v23 = vadd.f32 %v576_v4, %v1477_v45 }
  0xf9   : > { %v645_v17 = vmul.f32 %v629_v9, %v517_v54  ;;  %1243 = vtanh.f32 %v605_v11  ;;  %v661_v27 = vpack.c.bf16 %v647_v10, %v646_v18  ;;  %v594_v32 = vadd.f32 %v578_v19, %v1469_v34 }
  0xfa   : > { %v1232_v20 = vpop.eup %1231  ;;  %v577_v22 = vmul.f32 %v561_v15, %v1493_v0  ;;  %v608_v31 = vmul.f32 0.7978846, %v592_v23  ;;  %v595_v36 = vadd.f32 %v579_v13, %v1485_v53  ;;  %v523_v35 = vmul.f32 0.5, %v1428_v52 }
  0xfb   : > { %v660_v26 = vpack.c.bf16 %v645_v17, %v644_v16  ;;  %v632_v37 = vadd.f32 1.0, %v1232_v20  ;;  %v634_v39 = vadd.f32 1.0, %v1230_v12  ;;  %v610_v43 = vmul.f32 0.7978846, %v594_v32 }
  0xfc   : > { %v1234_v29 = vpop.eup %1233  ;;  %v593_v30 = vadd.f32 %v577_v22, %v1493_v0  ;;  %1245 = vtanh.f32 %v608_v31  ;;  %v611_v46 = vmul.f32 0.7978846, %v595_v36  ;;  %v520_v47 = vmul.f32 0.5, %v1419_v44  ;;  %v671_v31 = vld [vmem:[#allocation2 + $0x18] sm:$0xff]  ;;  %v669_v36 = vld [vmem:[#allocation2 + $0x8] sm:$0xff] }
  0xfd   : > { %1146 = vmatprep.mubr.bf16.mxu0 %v660_v26  ;;  %v635_v40 = vadd.f32 1.0, %v1234_v29  ;;  %v521_v21 = vmul.f32 0.5, %v1432_v57  ;;  %v522_v49 = vmul.f32 0.5, %v1413_v38  ;;  %v527_v57 = vmul.f32 0.5, %v1454_v14 }
  0xfe   : > { %v1236_v41 = vpop.eup %1235  ;;  %1147 = vmatmul.mubr.bf16.vlgmr.msra.gmra.mxu0 %v661_v27  ;;  %v609_v42 = vmul.f32 0.7978846, %v593_v30  ;;  %v648_v51 = vmul.f32 %v632_v37, %v520_v47  ;;  %v524_v61 = vmul.f32 0.5, %v1446_v6  ;;  %v525_v62 = vmul.f32 0.5, %v1462_v25 }
  0xff   : > { %v633_v48 = vadd.f32 1.0, %v1236_v41  ;;  %v651_v50 = vmul.f32 %v635_v40, %v523_v35  ;;  %v650_v55 = vmul.f32 %v634_v39, %v522_v49  ;;  %v526_v2 = vmul.f32 0.5, %v1439_v63  ;;  %v674_v35 = vld [vmem:[#allocation2 + $0x30] sm:$0xff]  ;;  %v1526_v40 = vld [vmem:[%s1607_s4] ss:$0 sm:$0xff] }
 0x100   : > { %1247 = vtanh.f32 %v609_v42  ;;  %v528_v12 = vmul.f32 0.5, %v1477_v45  ;;  %v529_v6 = vmul.f32 0.5, %v1493_v0  ;;  %v530_v63 = vmul.f32 0.5, %v1469_v34  ;;  %v670_v45 = vld [vmem:[#allocation2 + $0x10] sm:$0xff]  ;;  %v668_v0 = vld [vmem:[#allocation2] sm:$0xff] }
 0x101   : > { %v649_v54 = vmul.f32 %v633_v48, %v521_v21  ;;  %1249 = vtanh.f32 %v610_v43  ;;  %v663_v28 = vpack.c.bf16 %v651_v50, %v650_v55  ;;  %v531_v17 = vmul.f32 0.5, %v1485_v53  ;;  %v672_v42 = vld [vmem:[#allocation2 + $0x20] sm:$0xff]  ;;  %v675_v21 = vld [vmem:[#allocation2 + $0x38] sm:$0xff] }
 0x102   : > { %v1238_v52 = vpop.eup %1237  ;;  %1251 = vtanh.f32 %v611_v46 }
 0x103   : > { %v662_v56 = vpack.c.bf16 %v649_v54, %v648_v51  ;;  %v636_v24 = vadd.f32 1.0, %v1238_v52  ;;  %v673_v54 = vld [vmem:[#allocation2 + $0x28] sm:$0xff] }
 0x104   : > { %v1240_v58 = vpop.eup %1239 }
 0x105   : > { %v1242_v59 = vpop.eup %1241  ;;  %1150 = vmatprep.mubr.bf16.mxu1 %v662_v56  ;;  %v638_v60 = vadd.f32 1.0, %v1240_v58  ;;  %v652_v3 = vmul.f32 %v636_v24, %v524_v61 }
 0x106   : > { %v1244_v44 = vpop.eup %1243  ;;  %1151 = vmatmul.mubr.bf16.vlgmr.msra.gmra.mxu1 %v663_v28  ;;  %v639_v38 = vadd.f32 1.0, %v1242_v59  ;;  %v678_v28 = vld [vmem:[#allocation2 + $0x50] sm:$0xff] }
 0x107   : > { %v637_v1 = vadd.f32 1.0, %v1244_v44  ;;  %v654_v5 = vmul.f32 %v638_v60, %v526_v2  ;;  %v676_v60 = vld [vmem:[#allocation2 + $0x40] sm:$0xff]  ;;  %v679_v2 = vld [vmem:[#allocation2 + $0x58] sm:$0xff] }
 0x108   : > { %v655_v33 = vmul.f32 %v639_v38, %v527_v57 }
 0x109   : > { %v653_v4 = vmul.f32 %v637_v1, %v525_v62  ;;  %v1246_v7 = vpop.eup %1245 }
 0x10a   : > { %v665_v9 = vpack.c.bf16 %v655_v33, %v654_v5  ;;  %v640_v10 = vadd.f32 1.0, %v1246_v7  ;;  %v677_v7 = vld [vmem:[#allocation2 + $0x48] sm:$0xff] }
 0x10b   : > { %v664_v8 = vpack.c.bf16 %v653_v4, %v652_v3 }
 0x10c   : > { %v656_v15 = vmul.f32 %v640_v10, %v528_v12 }
 0x10d   : > { %v1248_v11 = vpop.eup %1247  ;;  %1154 = vmatprep.mubr.bf16.mxu1 %v664_v8 }
 0x10e   : > { %v1250_v14 = vpop.eup %1249  ;;  %1155 = vmatmul.mubr.bf16.gmra.mxu1 %v665_v9  ;;  %v641_v25 = vadd.f32 1.0, %v1248_v11 }
 0x10f   : > { %v1252_v19 = vpop.eup %1251  ;;  %v642_v13 = vadd.f32 1.0, %v1250_v14  ;;  %v682_v14 = vld [vmem:[#allocation2 + $0x70] sm:$0xff] }
 0x110   : > { %v657_v16 = vmul.f32 %v641_v25, %v529_v6  ;;  %v643_v18 = vadd.f32 1.0, %v1252_v19 }
 0x111   : > { %v658_v22 = vmul.f32 %v642_v13, %v530_v63  ;;  %v680_v63 = vld [vmem:[#allocation2 + $0x60] sm:$0xff] }
 0x112   : > { %v666_v20 = vpack.c.bf16 %v657_v16, %v656_v15  ;;  %v659_v23 = vmul.f32 %v643_v18, %v531_v17  ;;  %v683_v18 = vld [vmem:[#allocation2 + $0x78] sm:$0xff] }
 0x114   : > { %1158 = vmatprep.mubr.bf16.mxu1 %v666_v20  ;;  %v667_v26 = vpack.c.bf16 %v659_v23, %v658_v22 }
 0x116   : > { %1159 = vmatmul.mubr.bf16.gmra.mxu1 %v667_v26 }
 0x1be   : > { %v1148_v27 = vpop.f32.mrf.mxu0 }
 0x1bf   : > { %v847_v29 = vadd.f32 %v1148_v27, %v670_v45  ;;  %v681_v45 = vld [vmem:[#allocation2 + $0x68] sm:$0xff] }
 0x1c0   : > { %v782_v30 = vpop.f32.mrf.mxu0 }
 0x1c1   : > { %863 = vst.msk [vmem:[#allocation2 + $0x10] sm:$0xff] %vm298_vm0, %v847_v29  ;;  %v845_v34 = vadd.f32 %v782_v30, %v668_v0 }
 0x1c2   : > { %v1149_v32 = vpop.f32.mrf.mxu0 }
 0x1c3   : > { %861 = vst.msk [vmem:[#allocation2] sm:$0xff] %vm298_vm0, %v845_v34  ;;  %v848_v53 = vadd.f32 %v1149_v32, %v671_v31 }
 0x1c4   : > { %v785_v37 = vpop.f32.mrf.mxu0 }
 0x1c5   : > { %864 = vst.msk [vmem:[#allocation2 + $0x18] sm:$0xff] %vm298_vm0, %v848_v53  ;;  %v846_v39 = vadd.f32 %v785_v37, %v669_v36 }
 0x1c6   : > { %v1152_v41 = vpop.f32.mrf.mxu1 }
 0x1c7   : > { %862 = vst.msk [vmem:[#allocation2 + $0x8] sm:$0xff] %vm298_vm0, %v846_v39  ;;  %v851_v43 = vadd.f32 %v1152_v41, %v674_v35 }
 0x1c8   : > { %v882_v46 = vld [vmem:[#allocation2 + $0x10] sm:$0xff]  ;;  %v798_v47 = vpop.f32.mrf.mxu1 }
 0x1c9   : > { %v905_v48 = vadd.f32 %v1526_v40, %v882_v46  ;;  %867 = vst.msk [vmem:[#allocation2 + $0x30] sm:$0xff] %vm298_vm0, %v851_v43  ;;  %v849_v49 = vadd.f32 %v798_v47, %v672_v42 }
 0x1ca   : > { %v880_v50 = vld [vmem:[#allocation2] sm:$0xff]  ;;  %v1153_v51 = vpop.f32.mrf.mxu1 }
 0x1cb   : > { %921 = vst.msk [vmem:[%s1532_s8 + $0x10] sm:$0xff] %vm298_vm0, %v905_v48  ;;  %v903_v52 = vadd.f32 %v1526_v40, %v880_v50  ;;  %865 = vst.msk [vmem:[#allocation2 + $0x20] sm:$0xff] %vm298_vm0, %v849_v49  ;;  %v852_v55 = vadd.f32 %v1153_v51, %v675_v21 }
 0x1cc   : > { %v883_v56 = vld [vmem:[#allocation2 + $0x18] sm:$0xff]  ;;  %v801_v58 = vpop.f32.mrf.mxu1 }
 0x1cd   : > { %919 = vst.msk [vmem:[%s1532_s8] sm:$0xff] %vm298_vm0, %v903_v52  ;;  %v906_v59 = vadd.f32 %v1526_v40, %v883_v56  ;;  %868 = vst.msk [vmem:[#allocation2 + $0x38] sm:$0xff] %vm298_vm0, %v852_v55  ;;  %v850_v24 = vadd.f32 %v801_v58, %v673_v54 }
 0x1ce   : > { %v881_v44 = vld [vmem:[#allocation2 + $0x8] sm:$0xff]  ;;  %v1156_v57 = vpop.f32.mrf.mxu1 }
 0x1cf   : > { %922 = vst.msk [vmem:[%s1532_s8 + $0x18] sm:$0xff] %vm298_vm0, %v906_v59  ;;  %v904_v38 = vadd.f32 %v1526_v40, %v881_v44  ;;  %866 = vst.msk [vmem:[#allocation2 + $0x28] sm:$0xff] %vm298_vm0, %v850_v24  ;;  %v855_v61 = vadd.f32 %v1156_v57, %v678_v28 }
 0x1d0   : > { %v886_v62 = vld [vmem:[#allocation2 + $0x30] sm:$0xff]  ;;  %v814_v1 = vpop.f32.mrf.mxu1 }
 0x1d1   : > { %920 = vst.msk [vmem:[%s1532_s8 + $0x8] sm:$0xff] %vm298_vm0, %v904_v38  ;;  %v909_v33 = vadd.f32 %v1526_v40, %v886_v62  ;;  %871 = vst.msk [vmem:[#allocation2 + $0x50] sm:$0xff] %vm298_vm0, %v855_v61  ;;  %v853_v3 = vadd.f32 %v814_v1, %v676_v60 }
 0x1d2   : > { %v884_v4 = vld [vmem:[#allocation2 + $0x20] sm:$0xff]  ;;  %v1157_v5 = vpop.f32.mrf.mxu1 }
 0x1d3   : > { %925 = vst.msk [vmem:[%s1532_s8 + $0x30] sm:$0xff] %vm298_vm0, %v909_v33  ;;  %v907_v8 = vadd.f32 %v1526_v40, %v884_v4  ;;  %869 = vst.msk [vmem:[#allocation2 + $0x40] sm:$0xff] %vm298_vm0, %v853_v3  ;;  %v856_v9 = vadd.f32 %v1157_v5, %v679_v2 }
 0x1d4   : > { %v887_v10 = vld [vmem:[#allocation2 + $0x38] sm:$0xff]  ;;  %v817_v11 = vpop.f32.mrf.mxu1 }
 0x1d5   : > { %923 = vst.msk [vmem:[%s1532_s8 + $0x20] sm:$0xff] %vm298_vm0, %v907_v8  ;;  %v910_v12 = vadd.f32 %v1526_v40, %v887_v10  ;;  %872 = vst.msk [vmem:[#allocation2 + $0x58] sm:$0xff] %vm298_vm0, %v856_v9  ;;  %v854_v6 = vadd.f32 %v817_v11, %v677_v7 }
 0x1d6   : > { %v885_v25 = vld [vmem:[#allocation2 + $0x28] sm:$0xff]  ;;  %v1160_v19 = vpop.f32.mrf.mxu1 }
 0x1d7   : > { %926 = vst.msk [vmem:[%s1532_s8 + $0x38] sm:$0xff] %vm298_vm0, %v910_v12  ;;  %v908_v13 = vadd.f32 %v1526_v40, %v885_v25  ;;  %870 = vst.msk [vmem:[#allocation2 + $0x48] sm:$0xff] %vm298_vm0, %v854_v6  ;;  %v859_v15 = vadd.f32 %v1160_v19, %v682_v14 }
 0x1d8   : > { %v890_v16 = vld [vmem:[#allocation2 + $0x50] sm:$0xff]  ;;  %v830_v17 = vpop.f32.mrf.mxu1 }
 0x1d9   : > { %924 = vst.msk [vmem:[%s1532_s8 + $0x28] sm:$0xff] %vm298_vm0, %v908_v13  ;;  %v913_v20 = vadd.f32 %v1526_v40, %v890_v16  ;;  %875 = vst.msk [vmem:[#allocation2 + $0x70] sm:$0xff] %vm298_vm0, %v859_v15  ;;  %v857_v22 = vadd.f32 %v830_v17, %v680_v63 }
 0x1da   : > { %v888_v23 = vld [vmem:[#allocation2 + $0x40] sm:$0xff]  ;;  %v1161_v26 = vpop.f32.mrf.mxu1 }
 0x1db   : > { %929 = vst.msk [vmem:[%s1532_s8 + $0x50] sm:$0xff] %vm298_vm0, %v913_v20  ;;  %v911_v27 = vadd.f32 %v1526_v40, %v888_v23  ;;  %873 = vst.msk [vmem:[#allocation2 + $0x60] sm:$0xff] %vm298_vm0, %v857_v22  ;;  %v860_v0 = vadd.f32 %v1161_v26, %v683_v18 }
 0x1dc   : > { %v891_v29 = vld [vmem:[#allocation2 + $0x58] sm:$0xff]  ;;  %v833_v30 = vpop.f32.mrf.mxu1 }
 0x1dd   : > { %927 = vst.msk [vmem:[%s1532_s8 + $0x40] sm:$0xff] %vm298_vm0, %v911_v27  ;;  %v914_v31 = vadd.f32 %v1526_v40, %v891_v29  ;;  %876 = vst.msk [vmem:[#allocation2 + $0x78] sm:$0xff] %vm298_vm0, %v860_v0  ;;  %v858_v34 = vadd.f32 %v833_v30, %v681_v45 }
 0x1de   : > { %v889_v32 = vld [vmem:[#allocation2 + $0x48] sm:$0xff] }
 0x1df   : > { %930 = vst.msk [vmem:[%s1532_s8 + $0x58] sm:$0xff] %vm298_vm0, %v914_v31  ;;  %v912_v36 = vadd.f32 %v1526_v40, %v889_v32  ;;  %874 = vst.msk [vmem:[#allocation2 + $0x68] sm:$0xff] %vm298_vm0, %v858_v34 }
 0x1e0   : > { %v894_v53 = vld [vmem:[#allocation2 + $0x70] sm:$0xff] }
 0x1e1   : > { %928 = vst.msk [vmem:[%s1532_s8 + $0x48] sm:$0xff] %vm298_vm0, %v912_v36  ;;  %v917_v37 = vadd.f32 %v1526_v40, %v894_v53 }
 0x1e2   : > { %v892_v35 = vld [vmem:[#allocation2 + $0x60] sm:$0xff] }
 0x1e3   : > { %933 = vst.msk [vmem:[%s1532_s8 + $0x70] sm:$0xff] %vm298_vm0, %v917_v37  ;;  %v915_v39 = vadd.f32 %v1526_v40, %v892_v35 }
 0x1e4   : > { %v895_v41 = vld [vmem:[#allocation2 + $0x78] sm:$0xff] }
 0x1e5   : > { %931 = vst.msk [vmem:[%s1532_s8 + $0x60] sm:$0xff] %vm298_vm0, %v915_v39  ;;  %v918_v42 = vadd.f32 %v1526_v40, %v895_v41 }
 0x1e6   : > { %v893_v43 = vld [vmem:[#allocation2 + $0x68] sm:$0xff] }
 0x1e7   : > { %934 = vst.msk [vmem:[%s1532_s8 + $0x78] sm:$0xff] %vm298_vm0, %v918_v42  ;;  %v916_v46 = vadd.f32 %v1526_v40, %v893_v43 }
 0x1e9   : > { %932 = vst.msk [vmem:[%s1532_s8 + $0x68] sm:$0xff] %vm298_vm0, %v916_v46 }
 0x1ea PF: > { %s15_s20 = sadd.s32 1, %s1275_s20   ;;  %s1609_s18 = smov %s1271_s19 }
 0x1eb   : > { %p12_p5 = scmp.ge.s32.totalorder %s15_s20, 4   ;;  %s1610_s19 = smov %s1612_s21 }
 0x1ed   :  { %14 = sbr.rel (!%p12_p5) target bundleno = 2 (0x2), region = 87 }

</bundles_post_ra>
